<compile_context>
chip_gen: v7x
topology: tpu7x:2x2x1
jax: 0.10.0
libtpu: 0.0.40
codegen_flags: <defaults>
</compile_context>

<pallas_src>
import jax
import jax.numpy as jnp
from jax.experimental import pallas as pl
from jax.experimental.pallas import tpu as pltpu

LANE = 128   # feature dims padded to lane width -> lane-dense stores
TM = 128     # A row tile (keeps >=2 row tiles on the parallel axis)


def _round_up(x, m):
    return ((x + m - 1) // m) * m


def _pick_tk(n_pad):
    # Largest k-tile (<=512) dividing the padded node dim.
    for tk in (512, 384, 256, 128):
        if n_pad % tk == 0:
            return tk
    return 128


# ---------------------------------------------------------------------------
# K2: layer-1 aggregation fused with normalization + bias + ReLU + layer-2 proj
#     acc  += (A[i,k] * d_row * d_col) @ XW[k]    (f32 accumulate over k)
#     HW[i] = relu(acc + b1) @ W2                 (on last k, bf16 lane-dense)
# ---------------------------------------------------------------------------
def _agg1_kernel(mask_ref, a_ref, dr_ref, dc_ref, xw_ref, b1_ref, w2_ref,
                 hw_ref, acc_ref):
    i = pl.program_id(0)
    k = pl.program_id(1)
    tk = a_ref.shape[1]

    @pl.when(k == 0)
    def _():
        acc_ref[...] = jnp.zeros_like(acc_ref)

    @pl.when(mask_ref[i, k] != 0)            # skip all-zero adjacency tiles
    def _():
        # Fused symmetric normalization in f32; single bf16 rounding for MXU.
        a = a_ref[...].astype(jnp.float32) * dr_ref[...] * dc_ref[...]
        off = pl.multiple_of(k * tk, tk)
        xw_k = xw_ref[pl.ds(off, tk), :]     # slice the VMEM-resident XW
        acc_ref[...] += jnp.dot(a.astype(jnp.bfloat16), xw_k,
                                preferred_element_type=jnp.float32)

    @pl.when(k == pl.num_programs(1) - 1)
    def _():
        h1 = jnp.maximum(acc_ref[...] + b1_ref[...], 0.0)    # bias + ReLU (f32)
        hw_ref[...] = jnp.dot(h1.astype(jnp.bfloat16), w2_ref[...],
                              preferred_element_type=jnp.float32
                              ).astype(hw_ref.dtype)


# ---------------------------------------------------------------------------
# K3: layer-2 aggregation  OUT[i] = sum_k (A[i,k]*d_row*d_col) @ HW[k] + b2
# ---------------------------------------------------------------------------
def _agg2_kernel(mask_ref, a_ref, dr_ref, dc_ref, hw_ref, b2_ref,
                 o_ref, acc_ref):
    i = pl.program_id(0)
    k = pl.program_id(1)
    tk = a_ref.shape[1]

    @pl.when(k == 0)
    def _():
        acc_ref[...] = jnp.zeros_like(acc_ref)

    @pl.when(mask_ref[i, k] != 0)
    def _():
        a = a_ref[...].astype(jnp.float32) * dr_ref[...] * dc_ref[...]
        off = pl.multiple_of(k * tk, tk)
        hw_k = hw_ref[pl.ds(off, tk), :]     # slice the VMEM-resident HW
        acc_ref[...] += jnp.dot(a.astype(jnp.bfloat16), hw_k,
                                preferred_element_type=jnp.float32)

    @pl.when(k == pl.num_programs(1) - 1)
    def _():
        o_ref[...] = acc_ref[...] + b2_ref[...]


def gcn_forward(x, edge_index, w1, b1, w2, b2):
    n, f_in = x.shape
    h_feats = w1.shape[1]
    num_classes = w2.shape[1]

    # --- XLA glue: raw adjacency + self-loops + degrees (PyG gcn_norm) ------
    src, dst = edge_index[0], edge_index[1]
    a = jnp.zeros((n, n), jnp.float32).at[dst, src].add(1.0)    # duplicates summed
    diag = jnp.diagonal(a)
    a = a + jnp.diag(jnp.where(diag > 0.0, 0.0, 1.0))           # only missing self-loops
    deg = jnp.sum(a, axis=1)
    d_inv_sqrt = jnp.where(deg > 0.0, 1.0 / jnp.sqrt(deg), 0.0)

    # --- padding / tiling ----------------------------------------------------
    n_pad = _round_up(n, TM)
    tk = _pick_tk(n_pad)
    h_pad = _round_up(h_feats, LANE)
    c_pad = _round_up(num_classes, LANE)
    n_i = n_pad // TM
    n_k = n_pad // tk

    # Raw adjacency in bf16 (small integer counts are exact); D^{-1/2} scaling
    # is applied in-kernel in f32.
    a_p = jnp.zeros((n_pad, n_pad), jnp.bfloat16).at[:n, :n].set(a.astype(jnp.bfloat16))
    d_row = jnp.zeros((n_pad, 1), jnp.float32).at[:n, 0].set(d_inv_sqrt)
    d_col = jnp.zeros((1, n_pad), jnp.float32).at[0, :n].set(d_inv_sqrt)

    # XW hoisted to plain XLA (K = f_in is tiny; fuses with pad/cast).
    xw = jnp.dot(x, w1, preferred_element_type=jnp.float32)
    xw_p = jnp.zeros((n_pad, h_pad), jnp.bfloat16).at[:n, :h_feats].set(
        xw.astype(jnp.bfloat16))

    b1_p = jnp.zeros((1, h_pad), jnp.float32).at[0, :h_feats].set(b1.astype(jnp.float32))
    w2_p = jnp.zeros((h_pad, c_pad), jnp.bfloat16).at[:h_feats, :num_classes].set(
        w2.astype(jnp.bfloat16))
    b2_p = jnp.zeros((1, c_pad), jnp.float32).at[0, :num_classes].set(b2.astype(jnp.float32))

    # Per-(i,k) tile-nonzero mask, built O(E + N) from edge_index (conservative
    # superset: every tile that may hold an edge or a self-loop is marked).
    node_idx = jnp.arange(n, dtype=jnp.int32)
    mask = jnp.zeros((n_i, n_k), jnp.int32)
    mask = mask.at[dst // TM, src // tk].set(1)
    mask = mask.at[node_idx // TM, node_idx // tk].set(1)

    cparams = pltpu.CompilerParams(
        dimension_semantics=("parallel", "arbitrary"),
        vmem_limit_bytes=32 * 1024 * 1024)

    # K2: HW = relu(A_hat @ XW + b1) @ W2
    hw = pl.pallas_call(
        _agg1_kernel,
        out_shape=jax.ShapeDtypeStruct((n_pad, c_pad), jnp.bfloat16),
        grid_spec=pltpu.PrefetchScalarGridSpec(
            num_scalar_prefetch=1,
            grid=(n_i, n_k),
            in_specs=[
                # zero tiles point at a fixed dummy block -> DMA skipped on runs
                pl.BlockSpec((TM, tk), lambda i, k, m: (m[i, k] * i, m[i, k] * k)),
                pl.BlockSpec((TM, 1), lambda i, k, m: (i, 0)),         # d_row
                pl.BlockSpec((1, tk), lambda i, k, m: (0, k)),         # d_col
                pl.BlockSpec((n_pad, h_pad), lambda i, k, m: (0, 0)),  # XW (resident)
                pl.BlockSpec((1, h_pad), lambda i, k, m: (0, 0)),      # b1
                pl.BlockSpec((h_pad, c_pad), lambda i, k, m: (0, 0)),  # W2
            ],
            out_specs=pl.BlockSpec((TM, c_pad), lambda i, k, m: (i, 0)),
            scratch_shapes=[pltpu.VMEM((TM, h_pad), jnp.float32)],
        ),
        compiler_params=cparams,
        cost_estimate=pl.CostEstimate(
            flops=2 * n_pad * n_pad * h_pad + 2 * n_pad * h_pad * c_pad,
            transcendentals=0,
            bytes_accessed=2 * n_pad * n_pad + 2 * n_pad * h_pad
            + 2 * h_pad * c_pad + 2 * n_pad * c_pad),
    )(mask, a_p, d_row, d_col, xw_p, b1_p, w2_p)

    # K3: OUT = A_hat @ HW + b2
    out_p = pl.pallas_call(
        _agg2_kernel,
        out_shape=jax.ShapeDtypeStruct((n_pad, c_pad), jnp.float32),
        grid_spec=pltpu.PrefetchScalarGridSpec(
            num_scalar_prefetch=1,
            grid=(n_i, n_k),
            in_specs=[
                pl.BlockSpec((TM, tk), lambda i, k, m: (m[i, k] * i, m[i, k] * k)),
                pl.BlockSpec((TM, 1), lambda i, k, m: (i, 0)),         # d_row
                pl.BlockSpec((1, tk), lambda i, k, m: (0, k)),         # d_col
                pl.BlockSpec((n_pad, c_pad), lambda i, k, m: (0, 0)),  # HW (resident)
                pl.BlockSpec((1, c_pad), lambda i, k, m: (0, 0)),      # b2
            ],
            out_specs=pl.BlockSpec((TM, c_pad), lambda i, k, m: (i, 0)),
            scratch_shapes=[pltpu.VMEM((TM, c_pad), jnp.float32)],
        ),
        compiler_params=cparams,
        cost_estimate=pl.CostEstimate(
            flops=2 * n_pad * n_pad * c_pad, transcendentals=0,
            bytes_accessed=2 * n_pad * n_pad + 2 * n_pad * c_pad
            + 4 * n_pad * c_pad),
    )(mask, a_p, d_row, d_col, hw, b2_p)

    return out_p[:n, :num_classes]


def gcn_reference(x, edge_index, w1, b1, w2, b2):
    n = x.shape[0]
    src, dst = edge_index[0], edge_index[1]
    a = jnp.zeros((n, n), jnp.float32).at[dst, src].add(1.0)
    diag = jnp.diagonal(a)
    a = a + jnp.diag(jnp.where(diag > 0.0, 0.0, 1.0))
    deg = jnp.sum(a, axis=1)
    d = jnp.where(deg > 0.0, 1.0 / jnp.sqrt(deg), 0.0)
    a_hat = a * d[:, None] * d[None, :]
    h = jnp.maximum(a_hat @ (x @ w1) + b1[None, :], 0.0)
    return a_hat @ (h @ w2) + b2[None, :]


if __name__ == "__main__":
    key = jax.random.PRNGKey(0)
    # 1024 nodes so the banded ring+chord graph yields genuinely all-zero
    # 128x512 adjacency tiles -> the scalar-prefetched tile-skip path is
    # exercised and validated against the dense reference.
    n_nodes, in_feats, h_feats, num_classes = 1024, 16, 32, 4
    k_x, k_w1, k_w2, k_b1, k_b2 = jax.random.split(key, 5)

    # Node features [N, in_feats]
    x = jax.random.normal(k_x, (n_nodes, in_feats), jnp.float32)

    # Deterministic undirected graph: ring plus a +7 chord per node. edge_index [2, 4N]
    idx = jnp.arange(n_nodes, dtype=jnp.int32)
    ring_dst = (idx + 1) % n_nodes
    chord_dst = (idx + 7) % n_nodes
    src = jnp.concatenate([idx, ring_dst, idx, chord_dst])
    dst = jnp.concatenate([ring_dst, idx, chord_dst, idx])
    edge_index = jnp.stack([src, dst])

    # Deterministic parameter init (Glorot-ish weights, small biases)
    w1 = jax.random.normal(k_w1, (in_feats, h_feats), jnp.float32) / jnp.sqrt(
        jnp.float32(in_feats))
    b1 = 0.1 * jax.random.normal(k_b1, (h_feats,), jnp.float32)
    w2 = jax.random.normal(k_w2, (h_feats, num_classes), jnp.float32) / jnp.sqrt(
        jnp.float32(h_feats))
    b2 = 0.1 * jax.random.normal(k_b2, (num_classes,), jnp.float32)

    fwd = jax.jit(gcn_forward)
    out = jax.block_until_ready(fwd(x, edge_index, w1, b1, w2, b2))

    ref = gcn_reference(x, edge_index, w1, b1, w2, b2)
    assert out.shape == (n_nodes, num_classes)
    # bf16 A/X/activations with f32 accumulation -> small quantization error.
    assert jnp.allclose(out, ref, atol=5e-2, rtol=5e-2), float(
        jnp.max(jnp.abs(out - ref)))

    print("KERNEL_OK")
</pallas_src>

<mosaic_0001>
module attributes {stable_mosaic.version = 11 : i64} {
  func.func private @main(%arg0: i32) attributes {dimension_semantics = [#tpu.dimension_semantics<core_parallel>], iteration_bounds = array<i64: 2>, tpu.core_type = #tpu.core_type<sc_scalar_subcore>, window_params = []} {
    return
  }
}

module attributes {stable_mosaic.version = 11 : i64} {
  func.func private @main(%arg0: i32) attributes {dimension_semantics = [#tpu.dimension_semantics<core_parallel>], iteration_bounds = array<i64: 2>, tpu.core_type = #tpu.core_type<sc_scalar_subcore>, window_params = []} {
    return
  }
}

module attributes {stable_mosaic.version = 11 : i64} {
  func.func @_agg2_kernel(%arg0: i32, %arg1: i32, %arg2: memref<8x2xi32, #tpu.memory_space<smem>>, %arg3: memref<128x512xbf16, #tpu.memory_space<vmem>>, %arg4: memref<128x1xf32, #tpu.memory_space<vmem>>, %arg5: memref<1x512xf32, #tpu.memory_space<vmem>>, %arg6: memref<1024x128xbf16, #tpu.memory_space<vmem>>, %arg7: memref<1x128xf32, #tpu.memory_space<vmem>>, %arg8: memref<128x128xf32, #tpu.memory_space<vmem>>, %arg9: memref<128x128xf32, #tpu.memory_space<vmem>>) attributes {dimension_semantics = [#tpu.dimension_semantics<parallel>, #tpu.dimension_semantics<arbitrary>], iteration_bounds = array<i64: 8, 2>, scalar_prefetch = 1 : i64, scratch_operands = 1 : i64, tpu.core_type = #tpu.core_type<tc>, window_params = [{transform_indices = @transform_0, window_bounds = array<i64: 128, 512>}, {transform_indices = @transform_1, window_bounds = array<i64: 128, 1>}, {transform_indices = @transform_2, window_bounds = array<i64: 1, 512>}, {pipeline_mode = #tpu.pipeline_mode<synchronous>, transform_indices = @transform_3, window_bounds = array<i64: 1024, 128>}, {pipeline_mode = #tpu.pipeline_mode<synchronous>, transform_indices = @transform_4, window_bounds = array<i64: 1, 128>}, {transform_indices = @transform_5, window_bounds = array<i64: 128, 128>}]} {
    %c0_i32 = arith.constant 0 : i32
    %0 = arith.cmpi eq, %arg1, %c0_i32 : i32
    %1 = arith.extui %0 : i1 to i32
    %c0_i32_0 = arith.constant 0 : i32
    %2 = arith.cmpi ne, %1, %c0_i32_0 : i32
    scf.if %2 {
      %cst = arith.constant 0.000000e+00 : f32
      %12 = vector.broadcast %cst : f32 to vector<128x128xf32>
      %c0 = arith.constant 0 : index
      %c0_4 = arith.constant 0 : index
      %13 = vector.load %arg9[%c0, %c0_4] : memref<128x128xf32, #tpu.memory_space<vmem>>, vector<128x128xf32>
      tpu.vector_store %arg9[%c0, %c0_4], %12 {strides = array<i32>} : memref<128x128xf32, #tpu.memory_space<vmem>>, vector<128x128xf32>,
    } else {
    }
    %3 = arith.index_cast %arg0 : i32 to index
    %4 = arith.index_cast %arg1 : i32 to index
    %5 = memref.load %arg2[%3, %4] : memref<8x2xi32, #tpu.memory_space<smem>>
    %c0_i32_1 = arith.constant 0 : i32
    %6 = arith.cmpi ne, %5, %c0_i32_1 : i32
    %7 = arith.extui %6 : i1 to i32
    %c0_i32_2 = arith.constant 0 : i32
    %8 = arith.cmpi ne, %7, %c0_i32_2 : i32
    scf.if %8 {
      %c0 = arith.constant 0 : index
      %c0_4 = arith.constant 0 : index
      %12 = vector.load %arg3[%c0, %c0_4] : memref<128x512xbf16, #tpu.memory_space<vmem>>, vector<128x512xbf16>
      %13 = arith.extf %12 : vector<128x512xbf16> to vector<128x512xf32>
      %c0_5 = arith.constant 0 : index
      %c0_6 = arith.constant 0 : index
      %14 = vector.load %arg4[%c0_5, %c0_6] : memref<128x1xf32, #tpu.memory_space<vmem>>, vector<128x1xf32>
      %15 = vector.broadcast %14 : vector<128x1xf32> to vector<128x512xf32>
      %16 = arith.mulf %13, %15 : vector<128x512xf32>
      %c0_7 = arith.constant 0 : index
      %c0_8 = arith.constant 0 : index
      %17 = vector.load %arg5[%c0_7, %c0_8] : memref<1x512xf32, #tpu.memory_space<vmem>>, vector<1x512xf32>
      %18 = vector.broadcast %17 : vector<1x512xf32> to vector<128x512xf32>
      %19 = arith.mulf %16, %18 : vector<128x512xf32>
      %c512_i32 = arith.constant 512 : i32
      %20 = arith.muli %arg1, %c512_i32 : i32
      %21 = tpu.assume_multiple %20, 512 : i32
      %22 = arith.index_cast %21 : i32 to index
      %c0_9 = arith.constant 0 : index
      %23 = vector.load %arg6[%22, %c0_9] : memref<1024x128xbf16, #tpu.memory_space<vmem>>, vector<512x128xbf16>
      %c0_10 = arith.constant 0 : index
      %c0_11 = arith.constant 0 : index
      %24 = vector.load %arg9[%c0_10, %c0_11] : memref<128x128xf32, #tpu.memory_space<vmem>>, vector<128x128xf32>
      %25 = arith.truncf %19 : vector<128x512xf32> to vector<128x512xbf16>
      %cst = arith.constant dense<0.000000e+00> : vector<128x128xf32>
      %26 = tpu.matmul %25, %23, %cst {dimension_numbers = #tpu.dot_dimension_numbers<[1], [0], [0], [1], [0, 0, 1, 1], [], []>} : vector<128x512xbf16>, vector<512x128xbf16>, vector<128x128xf32> -> vector<128x128xf32>
      %27 = arith.addf %24, %26 : vector<128x128xf32>
      %c0_12 = arith.constant 0 : index
      %c0_13 = arith.constant 0 : index
      %28 = vector.load %arg9[%c0_12, %c0_13] : memref<128x128xf32, #tpu.memory_space<vmem>>, vector<128x128xf32>
      tpu.vector_store %arg9[%c0_12, %c0_13], %27 {strides = array<i32>} : memref<128x128xf32, #tpu.memory_space<vmem>>, vector<128x128xf32>,
    } else {
    }
    %c1_i32 = arith.constant 1 : i32
    %9 = arith.cmpi eq, %arg1, %c1_i32 : i32
    %10 = arith.extui %9 : i1 to i32
    %c0_i32_3 = arith.constant 0 : i32
    %11 = arith.cmpi ne, %10, %c0_i32_3 : i32
    scf.if %11 {
      %c0 = arith.constant 0 : index
      %c0_4 = arith.constant 0 : index
      %12 = vector.load %arg9[%c0, %c0_4] : memref<128x128xf32, #tpu.memory_space<vmem>>, vector<128x128xf32>
      %c0_5 = arith.constant 0 : index
      %c0_6 = arith.constant 0 : index
      %13 = vector.load %arg7[%c0_5, %c0_6] : memref<1x128xf32, #tpu.memory_space<vmem>>, vector<1x128xf32>
      %14 = vector.broadcast %13 : vector<1x128xf32> to vector<128x128xf32>
      %15 = arith.addf %12, %14 : vector<128x128xf32>
      %c0_7 = arith.constant 0 : index
      %c0_8 = arith.constant 0 : index
      %16 = vector.load %arg8[%c0_7, %c0_8] : memref<128x128xf32, #tpu.memory_space<vmem>>, vector<128x128xf32>
      tpu.vector_store %arg8[%c0_7, %c0_8], %15 {strides = array<i32>} : memref<128x128xf32, #tpu.memory_space<vmem>>, vector<128x128xf32>,
    } else {
    }
    return
  }
  func.func @transform_0(%arg0: i32, %arg1: i32, %arg2: memref<8x2xi32, #tpu.memory_space<smem>>) -> (i32, i32) {
    %0 = arith.index_cast %arg0 : i32 to index
    %1 = arith.index_cast %arg1 : i32 to index
    %2 = memref.load %arg2[%0, %1] : memref<8x2xi32, #tpu.memory_space<smem>>
    %3 = arith.muli %2, %arg0 : i32
    %4 = arith.index_cast %arg0 : i32 to index
    %5 = arith.index_cast %arg1 : i32 to index
    %6 = memref.load %arg2[%4, %5] : memref<8x2xi32, #tpu.memory_space<smem>>
    %7 = arith.muli %6, %arg1 : i32
    %c0_i32 = arith.constant 0 : i32
    return %3, %7 : i32, i32
  }
  func.func @transform_1(%arg0: i32, %arg1: i32, %arg2: memref<8x2xi32, #tpu.memory_space<smem>>) -> (i32, i32) {
    %c0_i32 = arith.constant 0 : i32
    %c0_i32_0 = arith.constant 0 : i32
    return %arg0, %c0_i32 : i32, i32
  }
  func.func @transform_2(%arg0: i32, %arg1: i32, %arg2: memref<8x2xi32, #tpu.memory_space<smem>>) -> (i32, i32) {
    %c0_i32 = arith.constant 0 : i32
    %c0_i32_0 = arith.constant 0 : i32
    return %c0_i32, %arg1 : i32, i32
  }
  func.func @transform_3(%arg0: i32, %arg1: i32, %arg2: memref<8x2xi32, #tpu.memory_space<smem>>) -> (i32, i32) {
    %c0_i32 = arith.constant 0 : i32
    %c0_i32_0 = arith.constant 0 : i32
    %c0_i32_1 = arith.constant 0 : i32
    return %c0_i32, %c0_i32_0 : i32, i32
  }
  func.func @transform_4(%arg0: i32, %arg1: i32, %arg2: memref<8x2xi32, #tpu.memory_space<smem>>) -> (i32, i32) {
    %c0_i32 = arith.constant 0 : i32
    %c0_i32_0 = arith.constant 0 : i32
    %c0_i32_1 = arith.constant 0 : i32
    return %c0_i32, %c0_i32_0 : i32, i32
  }
  func.func @transform_5(%arg0: i32, %arg1: i32, %arg2: memref<8x2xi32, #tpu.memory_space<smem>>) -> (i32, i32) {
    %c0_i32 = arith.constant 0 : i32
    %c0_i32_0 = arith.constant 0 : i32
    return %arg0, %c0_i32 : i32, i32
  }
}

module attributes {stable_mosaic.version = 11 : i64} {
  func.func @_agg1_kernel(%arg0: i32, %arg1: i32, %arg2: memref<8x2xi32, #tpu.memory_space<smem>>, %arg3: memref<128x512xbf16, #tpu.memory_space<vmem>>, %arg4: memref<128x1xf32, #tpu.memory_space<vmem>>, %arg5: memref<1x512xf32, #tpu.memory_space<vmem>>, %arg6: memref<1024x128xbf16, #tpu.memory_space<vmem>>, %arg7: memref<1x128xf32, #tpu.memory_space<vmem>>, %arg8: memref<128x128xbf16, #tpu.memory_space<vmem>>, %arg9: memref<128x128xbf16, #tpu.memory_space<vmem>>, %arg10: memref<128x128xf32, #tpu.memory_space<vmem>>) attributes {dimension_semantics = [#tpu.dimension_semantics<parallel>, #tpu.dimension_semantics<arbitrary>], iteration_bounds = array<i64: 8, 2>, scalar_prefetch = 1 : i64, scratch_operands = 1 : i64, tpu.core_type = #tpu.core_type<tc>, window_params = [{transform_indices = @transform_0, window_bounds = array<i64: 128, 512>}, {transform_indices = @transform_1, window_bounds = array<i64: 128, 1>}, {transform_indices = @transform_2, window_bounds = array<i64: 1, 512>}, {pipeline_mode = #tpu.pipeline_mode<synchronous>, transform_indices = @transform_3, window_bounds = array<i64: 1024, 128>}, {pipeline_mode = #tpu.pipeline_mode<synchronous>, transform_indices = @transform_4, window_bounds = array<i64: 1, 128>}, {pipeline_mode = #tpu.pipeline_mode<synchronous>, transform_indices = @transform_5, window_bounds = array<i64: 128, 128>}, {transform_indices = @transform_6, window_bounds = array<i64: 128, 128>}]} {
    %c0_i32 = arith.constant 0 : i32
    %0 = arith.cmpi eq, %arg1, %c0_i32 : i32
    %1 = arith.extui %0 : i1 to i32
    %c0_i32_0 = arith.constant 0 : i32
    %2 = arith.cmpi ne, %1, %c0_i32_0 : i32
    scf.if %2 {
      %cst = arith.constant 0.000000e+00 : f32
      %12 = vector.broadcast %cst : f32 to vector<128x128xf32>
      %c0 = arith.constant 0 : index
      %c0_4 = arith.constant 0 : index
      %13 = vector.load %arg10[%c0, %c0_4] : memref<128x128xf32, #tpu.memory_space<vmem>>, vector<128x128xf32>
      tpu.vector_store %arg10[%c0, %c0_4], %12 {strides = array<i32>} : memref<128x128xf32, #tpu.memory_space<vmem>>, vector<128x128xf32>,
    } else {
    }
    %3 = arith.index_cast %arg0 : i32 to index
    %4 = arith.index_cast %arg1 : i32 to index
    %5 = memref.load %arg2[%3, %4] : memref<8x2xi32, #tpu.memory_space<smem>>
    %c0_i32_1 = arith.constant 0 : i32
    %6 = arith.cmpi ne, %5, %c0_i32_1 : i32
    %7 = arith.extui %6 : i1 to i32
    %c0_i32_2 = arith.constant 0 : i32
    %8 = arith.cmpi ne, %7, %c0_i32_2 : i32
    scf.if %8 {
      %c0 = arith.constant 0 : index
      %c0_4 = arith.constant 0 : index
      %12 = vector.load %arg3[%c0, %c0_4] : memref<128x512xbf16, #tpu.memory_space<vmem>>, vector<128x512xbf16>
      %13 = arith.extf %12 : vector<128x512xbf16> to vector<128x512xf32>
      %c0_5 = arith.constant 0 : index
      %c0_6 = arith.constant 0 : index
      %14 = vector.load %arg4[%c0_5, %c0_6] : memref<128x1xf32, #tpu.memory_space<vmem>>, vector<128x1xf32>
      %15 = vector.broadcast %14 : vector<128x1xf32> to vector<128x512xf32>
      %16 = arith.mulf %13, %15 : vector<128x512xf32>
      %c0_7 = arith.constant 0 : index
      %c0_8 = arith.constant 0 : index
      %17 = vector.load %arg5[%c0_7, %c0_8] : memref<1x512xf32, #tpu.memory_space<vmem>>, vector<1x512xf32>
      %18 = vector.broadcast %17 : vector<1x512xf32> to vector<128x512xf32>
      %19 = arith.mulf %16, %18 : vector<128x512xf32>
      %c512_i32 = arith.constant 512 : i32
      %20 = arith.muli %arg1, %c512_i32 : i32
      %21 = tpu.assume_multiple %20, 512 : i32
      %22 = arith.index_cast %21 : i32 to index
      %c0_9 = arith.constant 0 : index
      %23 = vector.load %arg6[%22, %c0_9] : memref<1024x128xbf16, #tpu.memory_space<vmem>>, vector<512x128xbf16>
      %c0_10 = arith.constant 0 : index
      %c0_11 = arith.constant 0 : index
      %24 = vector.load %arg10[%c0_10, %c0_11] : memref<128x128xf32, #tpu.memory_space<vmem>>, vector<128x128xf32>
      %25 = arith.truncf %19 : vector<128x512xf32> to vector<128x512xbf16>
      %cst = arith.constant dense<0.000000e+00> : vector<128x128xf32>
      %26 = tpu.matmul %25, %23, %cst {dimension_numbers = #tpu.dot_dimension_numbers<[1], [0], [0], [1], [0, 0, 1, 1], [], []>} : vector<128x512xbf16>, vector<512x128xbf16>, vector<128x128xf32> -> vector<128x128xf32>
      %27 = arith.addf %24, %26 : vector<128x128xf32>
      %c0_12 = arith.constant 0 : index
      %c0_13 = arith.constant 0 : index
      %28 = vector.load %arg10[%c0_12, %c0_13] : memref<128x128xf32, #tpu.memory_space<vmem>>, vector<128x128xf32>
      tpu.vector_store %arg10[%c0_12, %c0_13], %27 {strides = array<i32>} : memref<128x128xf32, #tpu.memory_space<vmem>>, vector<128x128xf32>,
    } else {
    }
    %c1_i32 = arith.constant 1 : i32
    %9 = arith.cmpi eq, %arg1, %c1_i32 : i32
    %10 = arith.extui %9 : i1 to i32
    %c0_i32_3 = arith.constant 0 : i32
    %11 = arith.cmpi ne, %10, %c0_i32_3 : i32
    scf.if %11 {
      %c0 = arith.constant 0 : index
      %c0_4 = arith.constant 0 : index
      %12 = vector.load %arg10[%c0, %c0_4] : memref<128x128xf32, #tpu.memory_space<vmem>>, vector<128x128xf32>
      %c0_5 = arith.constant 0 : index
      %c0_6 = arith.constant 0 : index
      %13 = vector.load %arg7[%c0_5, %c0_6] : memref<1x128xf32, #tpu.memory_space<vmem>>, vector<1x128xf32>
      %14 = vector.broadcast %13 : vector<1x128xf32> to vector<128x128xf32>
      %15 = arith.addf %12, %14 : vector<128x128xf32>
      %cst = arith.constant 0.000000e+00 : f32
      %16 = vector.broadcast %cst : f32 to vector<128x128xf32>
      %17 = arith.maximumf %15, %16 : vector<128x128xf32>
      %18 = arith.truncf %17 : vector<128x128xf32> to vector<128x128xbf16>
      %c0_7 = arith.constant 0 : index
      %c0_8 = arith.constant 0 : index
      %19 = vector.load %arg8[%c0_7, %c0_8] : memref<128x128xbf16, #tpu.memory_space<vmem>>, vector<128x128xbf16>
      %cst_9 = arith.constant dense<0.000000e+00> : vector<128x128xf32>
      %20 = tpu.matmul %18, %19, %cst_9 {dimension_numbers = #tpu.dot_dimension_numbers<[1], [0], [0], [1], [0, 0, 1, 1], [], []>} : vector<128x128xbf16>, vector<128x128xbf16>, vector<128x128xf32> -> vector<128x128xf32>
      %21 = arith.truncf %20 : vector<128x128xf32> to vector<128x128xbf16>
      %c0_10 = arith.constant 0 : index
      %c0_11 = arith.constant 0 : index
      %22 = vector.load %arg9[%c0_10, %c0_11] : memref<128x128xbf16, #tpu.memory_space<vmem>>, vector<128x128xbf16>
      tpu.vector_store %arg9[%c0_10, %c0_11], %21 {strides = array<i32>} : memref<128x128xbf16, #tpu.memory_space<vmem>>, vector<128x128xbf16>,
    } else {
    }
    return
  }
  func.func @transform_0(%arg0: i32, %arg1: i32, %arg2: memref<8x2xi32, #tpu.memory_space<smem>>) -> (i32, i32) {
    %0 = arith.index_cast %arg0 : i32 to index
    %1 = arith.index_cast %arg1 : i32 to index
    %2 = memref.load %arg2[%0, %1] : memref<8x2xi32, #tpu.memory_space<smem>>
    %3 = arith.muli %2, %arg0 : i32
    %4 = arith.index_cast %arg0 : i32 to index
    %5 = arith.index_cast %arg1 : i32 to index
    %6 = memref.load %arg2[%4, %5] : memref<8x2xi32, #tpu.memory_space<smem>>
    %7 = arith.muli %6, %arg1 : i32
    %c0_i32 = arith.constant 0 : i32
    return %3, %7 : i32, i32
  }
  func.func @transform_1(%arg0: i32, %arg1: i32, %arg2: memref<8x2xi32, #tpu.memory_space<smem>>) -> (i32, i32) {
    %c0_i32 = arith.constant 0 : i32
    %c0_i32_0 = arith.constant 0 : i32
    return %arg0, %c0_i32 : i32, i32
  }
  func.func @transform_2(%arg0: i32, %arg1: i32, %arg2: memref<8x2xi32, #tpu.memory_space<smem>>) -> (i32, i32) {
    %c0_i32 = arith.constant 0 : i32
    %c0_i32_0 = arith.constant 0 : i32
    return %c0_i32, %arg1 : i32, i32
  }
  func.func @transform_3(%arg0: i32, %arg1: i32, %arg2: memref<8x2xi32, #tpu.memory_space<smem>>) -> (i32, i32) {
    %c0_i32 = arith.constant 0 : i32
    %c0_i32_0 = arith.constant 0 : i32
    %c0_i32_1 = arith.constant 0 : i32
    return %c0_i32, %c0_i32_0 : i32, i32
  }
  func.func @transform_4(%arg0: i32, %arg1: i32, %arg2: memref<8x2xi32, #tpu.memory_space<smem>>) -> (i32, i32) {
    %c0_i32 = arith.constant 0 : i32
    %c0_i32_0 = arith.constant 0 : i32
    %c0_i32_1 = arith.constant 0 : i32
    return %c0_i32, %c0_i32_0 : i32, i32
  }
  func.func @transform_5(%arg0: i32, %arg1: i32, %arg2: memref<8x2xi32, #tpu.memory_space<smem>>) -> (i32, i32) {
    %c0_i32 = arith.constant 0 : i32
    %c0_i32_0 = arith.constant 0 : i32
    %c0_i32_1 = arith.constant 0 : i32
    return %c0_i32, %c0_i32_0 : i32, i32
  }
  func.func @transform_6(%arg0: i32, %arg1: i32, %arg2: memref<8x2xi32, #tpu.memory_space<smem>>) -> (i32, i32) {
    %c0_i32 = arith.constant 0 : i32
    %c0_i32_0 = arith.constant 0 : i32
    return %arg0, %c0_i32 : i32, i32
  }
}

</mosaic_0001>

<bundles_post_ra>
// kernel: gcn_forward.3
= control target key start
LH: loop header
LB: loop body
LE: loop exit
PB: predicated region body
PF: predicated region fallthrough
CT: control target
= control target key end

     0   :  { %s2308_s0 = inlined_call_operand.vmem [shape: s32[8,2], index: 0, kind: input, shape index: {}]   ;;  %s2309_s1 = inlined_call_operand.vmem [shape: bf16[1024,1024], index: 1, kind: input, shape index: {}]   ;;  %s2310_s2 = inlined_call_operand.vmem [shape: f32[1024,1], index: 2, kind: input, shape index: {}]   ;;  %s2311_s3 = inlined_call_operand.vmem [shape: f32[1,1024], index: 3, kind: input, shape index: {}]   ;;  %s2312_s4 = inlined_call_operand.vmem [shape: bf16[1024,128], index: 4, kind: input, shape index: {}]   ;;  %s2313_s5 = inlined_call_operand.vmem [shape: f32[1,128], index: 5, kind: input, shape index: {}]   ;;  %s2314_s6 = inlined_call_operand.vmem [shape: f32[1024,128], index: 6, kind: output, shape index: {}]  }
   0x1   :  { %2315 = sst [smem:[#allocation7_spill]] %s2312_s4  ;;  %s11_s23 = sshll.u32 %s2308_s0, 4  ;;  %s12_s23 = int_to_ptr.vmem [resolvable:$true] %s11_s23 }
   0x2   :  { %2316 = sst [smem:[#allocation8_spill]] %s2313_s5  ;;  %s1766_s24 = scalar_lea.vmem %s12_s23, 128 }
   0x3   :  { %p1767_p0 = scmp.ne.s32.totalorder %s12_s23, %s1766_s24  ;;  %p1771_p1 = scmp.lt.s32.totalorder %s12_s23, %s12_s23 }
   0x4   :  { %p1772_p2 = scmp.lt.s32.totalorder %s1766_s24, %s1766_s24 }
   0x6   :  { %p1773_p3 = por %p1772_p2, %p1771_p1 }
   0x8   :  { %p1774_p4 = pnand %p1773_p3, %p1767_p0 }
   0xa   :  { %1777 = shalt.err (!%p1774_p4)  }
   0xb   :  { %s1836_s25 = smov [#allocation4]  }
   0xc   :  { %14 = dma.vmem_to_smem %s12_s23, 128, %s1836_s25, [#allocation3] }
   0xd   :  { %1806 = dma.done.wait [#allocation3], 128 }
   0xe   :  { %1807 = vsyncadd [#allocation3], 4294967168 }
   0xf   :  { %16 = sfence }
  0x10   :  { %s1877_s26 = smov 0   ;;  %s1879_s27 = smov 0  }
  0x11   :  { %s1881_s28 = smov 0   ;;  %s1883_s0 = smov 0  }
  0x12   :  { %s1885_s29 = smov 0   ;;  %s1887_s30 = smov 0  }
  0x13   :  { %s1889_s7 = smov 0  }
  0x14 LB: > { %s31_s8 = sadd.s32 1, %s1826_s29  ;;  %s34_s9 = sadd.s32 1, %s1830_s30  ;;  %s1834_s7 = sphi %s1889_s7, %s22_s7   ;;  %s1830_s30 = sphi %s1887_s30, %s2325_s30   ;;  %s1826_s29 = sphi %s1885_s29, %s2324_s29   ;;  %s1822_s0 = sphi %s1883_s0, %s2323_s0   ;;  %s1818_s28 = sphi %s1881_s28, %s2322_s28   ;;  %s1814_s27 = sphi %s1879_s27, %s2321_s27   ;;  %s1810_s26 = sphi %s1877_s26, %s2320_s26  }
  0x15   : > { %p32_p5 = scmp.ge.s32.totalorder %s31_s8, 2  ;;  %s38_s10 = sshra.s32 %s1826_s29, 7 }
  0x16   : > { %s40_s11 = sadd.s32 %s1830_s30, %s38_s10  ;;  %s43_s12 = sand.u32 127, %s1826_s29 }
  0x17   : > { %s2327_s8 = smov (%p32_p5, %s31_s8), 0  ;;  %s2329_s9 = smov (!%p32_p5, %s34_s9), %s1830_s30 }
  0x18   : > { %s1486_s13 = sshll.u32 %s40_s11, 7  ;;  %p36_p6 = scmp.ge.s32.totalorder %s2329_s9, 8 }
  0x19   : > { %s44_s14 = sadd.s32 %s1486_s13, %s43_s12  ;;  %s48_s16 = sshra.s32 %s2327_s8, 7 }
  0x1a   : > { %s45_s15 = sld [smem:[#allocation4 + %s44_s14]]  ;;  %s2331_s9 = smov (%p36_p6, %s2329_s9), 0 }
  0x1b   : > { %s53_s17 = sand.u32 127, %s2327_s8  ;;  %p70_p7 = scmp.ne.s32.totalorder %s1814_s27, %s1810_s26 }
  0x1c   : > { %s50_s18 = sadd.s32 %s48_s16, %s2331_s9  ;;  %p71_p8 = scmp.eq.s32.totalorder %s1834_s7, 0 }
  0x1d   : > { %s1487_s19 = sshll.u32 %s50_s18, 7  ;;  %s63_s5 = sadd.s32 1, %s1814_s27 }
  0x1e   : > { %s54_s20 = sadd.s32 %s1487_s19, %s53_s17  ;;  %p1928_p9 = por %p71_p8, %p70_p7 }
  0x1f   : > { %s55_s22 = sld [smem:[#allocation4 + %s54_s20]]  ;;  %p1489_p11 = scmp.ge.s32.totalorder %s1834_s7, 16 }
  0x20   : > { %s46_s23 = smul.u32 %s1830_s30, %s45_s15 }
  0x21   : > { %s47_s24 = smul.u32 %s1826_s29, %s45_s15 }
  0x25   : > { %s56_s25 = smul.u32 %s55_s22, %s2331_s9 }
  0x26   : > { %s57_s10 = smul.u32 %s55_s22, %s2327_s8 }
  0x27   : > { %s58_s11 = ssub.s32 %s46_s23, %s56_s25  ;;  %222 = sbr.rel (%p1489_p11) target bundleno = 76 (0x4c), region = 24 }
  0x28   : > { %s59_s12 = ssub.s32 %s47_s24, %s57_s10 }
  0x29   : > { %s60_s13 = sor.u32 %s59_s12, %s58_s11 }
  0x2a   : > { %p61_p10 = scmp.eq.s32.totalorder %s60_s13, 0 }
  0x2c   : > { %s1938_s4 = scalar_select %p61_p10, %s1814_s27, %s63_s5  }
  0x2e   : > { %225 = sbr.rel (!%p1928_p9) target bundleno = 76 (0x4c), region = 28  ;;  %s237_s16 = sld [smem:[#allocation4 + %s44_s14]] (%p1928_p9) }
  0x2f   : > { %s227_s15 = sand.u32 (%p1928_p9), 1, %s1814_s27  }
  0x30   : > { %s1490_s19 = sshll.u32 (%p1928_p9), %s227_s15, 8 }
  0x31   : > { %s1954_s14 = scalar_lea.vmem (%p1928_p9), [#allocation5], %s1490_s19 }
  0x34   : > { %s238_s17 = smul.u32 (%p1928_p9), %s1830_s30, %s237_s16 }
  0x35   : > { %s239_s18 = smul.u32 %s1826_s29, %s237_s16 }
  0x36   : > { %s1544_s20 = sshll.u32 %s238_s17, 7 }
  0x37   : > { %s1493_s22 = sshll.u32 %s239_s18, 2 }
  0x38   : > { %s243_s23 = sadd.s32 %s1544_s20, %s1493_s22 }
  0x39   : > { %s1495_s24 = sshll.u32 %s243_s23, 2 }
  0x3a   : > { %s1949_s10 = scalar_lea.vmem %s2309_s1, %s1495_s24 }
  0x3b   : > { %v258_v0 = vld [vmem:[%s1949_s10] sm:$0xff]  ;;  %v260_v1 = vld [vmem:[%s1949_s10 + $0x8] sm:$0xff] }
  0x3c   : > { %v262_v2 = vld [vmem:[%s1949_s10 + $0x20] sm:$0xff]  ;;  %259 = vst [vmem:[%s1954_s14] sm:$0xff] %v258_v0  ;;  %261 = vst [vmem:[%s1954_s14 + $0x8] sm:$0xff] %v260_v1  ;;  %v264_v3 = vld [vmem:[%s1949_s10 + $0x28] sm:$0xff] }
  0x3d   : > { %263 = vst [vmem:[%s1954_s14 + $0x10] sm:$0xff] %v262_v2  ;;  %v266_v4 = vld [vmem:[%s1949_s10 + $0x40] sm:$0xff]  ;;  %v268_v5 = vld [vmem:[%s1949_s10 + $0x48] sm:$0xff]  ;;  %265 = vst [vmem:[%s1954_s14 + $0x18] sm:$0xff] %v264_v3 }
  0x3e   : > { %267 = vst [vmem:[%s1954_s14 + $0x20] sm:$0xff] %v266_v4  ;;  %269 = vst [vmem:[%s1954_s14 + $0x28] sm:$0xff] %v268_v5  ;;  %v270_v6 = vld [vmem:[%s1949_s10 + $0x60] sm:$0xff]  ;;  %v272_v7 = vld [vmem:[%s1949_s10 + $0x68] sm:$0xff] }
  0x3f   : > { %v274_v8 = vld [vmem:[%s1949_s10 + $0x80] sm:$0xff]  ;;  %271 = vst [vmem:[%s1954_s14 + $0x30] sm:$0xff] %v270_v6  ;;  %273 = vst [vmem:[%s1954_s14 + $0x38] sm:$0xff] %v272_v7  ;;  %v276_v9 = vld [vmem:[%s1949_s10 + $0x88] sm:$0xff] }
  0x40   : > { %275 = vst [vmem:[%s1954_s14 + $0x40] sm:$0xff] %v274_v8  ;;  %v278_v10 = vld [vmem:[%s1949_s10 + $0xa0] sm:$0xff]  ;;  %v280_v11 = vld [vmem:[%s1949_s10 + $0xa8] sm:$0xff]  ;;  %277 = vst [vmem:[%s1954_s14 + $0x48] sm:$0xff] %v276_v9 }
  0x41   : > { %279 = vst [vmem:[%s1954_s14 + $0x50] sm:$0xff] %v278_v10  ;;  %281 = vst [vmem:[%s1954_s14 + $0x58] sm:$0xff] %v280_v11  ;;  %v282_v12 = vld [vmem:[%s1949_s10 + $0xc0] sm:$0xff]  ;;  %v284_v13 = vld [vmem:[%s1949_s10 + $0xc8] sm:$0xff] }
  0x42   : > { %v286_v14 = vld [vmem:[%s1949_s10 + $0xe0] sm:$0xff]  ;;  %283 = vst [vmem:[%s1954_s14 + $0x60] sm:$0xff] %v282_v12  ;;  %285 = vst [vmem:[%s1954_s14 + $0x68] sm:$0xff] %v284_v13  ;;  %v288_v15 = vld [vmem:[%s1949_s10 + $0xe8] sm:$0xff] }
  0x43   : > { %287 = vst [vmem:[%s1954_s14 + $0x70] sm:$0xff] %v286_v14  ;;  %v290_v16 = vld [vmem:[%s1949_s10 + $0x100] sm:$0xff]  ;;  %v292_v17 = vld [vmem:[%s1949_s10 + $0x108] sm:$0xff]  ;;  %289 = vst [vmem:[%s1954_s14 + $0x78] sm:$0xff] %v288_v15 }
  0x44   : > { %291 = vst [vmem:[%s1954_s14 + $0x80] sm:$0xff] %v290_v16  ;;  %293 = vst [vmem:[%s1954_s14 + $0x88] sm:$0xff] %v292_v17  ;;  %v294_v18 = vld [vmem:[%s1949_s10 + $0x120] sm:$0xff]  ;;  %v296_v19 = vld [vmem:[%s1949_s10 + $0x128] sm:$0xff] }
  0x45   : > { %v298_v20 = vld [vmem:[%s1949_s10 + $0x140] sm:$0xff]  ;;  %295 = vst [vmem:[%s1954_s14 + $0x90] sm:$0xff] %v294_v18  ;;  %297 = vst [vmem:[%s1954_s14 + $0x98] sm:$0xff] %v296_v19  ;;  %v300_v21 = vld [vmem:[%s1949_s10 + $0x148] sm:$0xff] }
  0x46   : > { %299 = vst [vmem:[%s1954_s14 + $0xa0] sm:$0xff] %v298_v20  ;;  %v302_v22 = vld [vmem:[%s1949_s10 + $0x160] sm:$0xff]  ;;  %v304_v23 = vld [vmem:[%s1949_s10 + $0x168] sm:$0xff]  ;;  %301 = vst [vmem:[%s1954_s14 + $0xa8] sm:$0xff] %v300_v21 }
  0x47   : > { %303 = vst [vmem:[%s1954_s14 + $0xb0] sm:$0xff] %v302_v22  ;;  %305 = vst [vmem:[%s1954_s14 + $0xb8] sm:$0xff] %v304_v23  ;;  %v306_v24 = vld [vmem:[%s1949_s10 + $0x180] sm:$0xff]  ;;  %v308_v25 = vld [vmem:[%s1949_s10 + $0x188] sm:$0xff] }
  0x48   : > { %v310_v26 = vld [vmem:[%s1949_s10 + $0x1a0] sm:$0xff]  ;;  %307 = vst [vmem:[%s1954_s14 + $0xc0] sm:$0xff] %v306_v24  ;;  %309 = vst [vmem:[%s1954_s14 + $0xc8] sm:$0xff] %v308_v25  ;;  %v312_v27 = vld [vmem:[%s1949_s10 + $0x1a8] sm:$0xff] }
  0x49   : > { %311 = vst [vmem:[%s1954_s14 + $0xd0] sm:$0xff] %v310_v26  ;;  %v314_v28 = vld [vmem:[%s1949_s10 + $0x1c0] sm:$0xff]  ;;  %v316_v29 = vld [vmem:[%s1949_s10 + $0x1c8] sm:$0xff]  ;;  %313 = vst [vmem:[%s1954_s14 + $0xd8] sm:$0xff] %v312_v27 }
  0x4a   : > { %315 = vst [vmem:[%s1954_s14 + $0xe0] sm:$0xff] %v314_v28  ;;  %317 = vst [vmem:[%s1954_s14 + $0xe8] sm:$0xff] %v316_v29  ;;  %v318_v30 = vld [vmem:[%s1949_s10 + $0x1e0] sm:$0xff]  ;;  %v320_v31 = vld [vmem:[%s1949_s10 + $0x1e8] sm:$0xff] }
  0x4b   : > { %319 = vst [vmem:[%s1954_s14 + $0xf0] sm:$0xff] %v318_v30  ;;  %321 = vst [vmem:[%s1954_s14 + $0xf8] sm:$0xff] %v320_v31 }
  0x4c PF: > { %p1496_p12 = scmp.ge.s32.totalorder %s1834_s7, 1  ;;  %p343_p13 = scmp.lt.s32.totalorder %s1834_s7, 17 }
  0x4e   : > { %p344_p0 = pnand %p1496_p12, %p343_p13 }
  0x4f   : > { %s350_s21 = sand.u32 (!%p344_p0), 1, %s1810_s26   ;;  %s1498_s11 = sshll.u32 (!%p344_p0), %s1822_s0, 4 }
  0x50   : > { %347 = sbr.rel (%p344_p0) target bundleno = 546 (0x222), region = 59  ;;  %s1497_s12 = sshll.u32 (!%p344_p0), %s350_s21, 8 }
  0x51   : > { %p399_p1 = scmp.lt.s32.totalorder (!%p344_p0), %s1498_s11, 127  ;;  %s1500_s13 = sshll.u32 (!%p344_p0), %s1818_s28, 2 }
  0x52   : > { %p405_p2 = scmp.lt.s32.totalorder (!%p344_p0), %s1500_s13, 7  ;;  %s2038_s5 = scalar_lea.vmem (!%p344_p0), [#allocation5], %s1497_s12 }
  0x53   : > { %p1503_p3 = scmp.ne.s32.totalorder (!%p344_p0), %s1818_s28, 0 }
  0x57   : > { %s2333_s11 = smov (!%p399_p1, %s1498_s11), 127  ;;  %s2335_s13 = smov (!%p405_p2, %s1500_s13), 7 }
  0x58   : > { %s1499_s16 = sshll.u32 %s2333_s11, 3  ;;  %s407_s24 = scalar_lea.vmem %s2311_s3, %s2335_s13  ;;  %v1837_v32 = vmov (!%p1503_p3), 0.0  }
  0x59   : > { %s2025_s18 = scalar_lea.vmem %s2310_s2, %s1499_s16  ;;  %s2030_s22 = scalar_lea.vmem %s2314_s6, %s1499_s16  ;;  %420 = vst [vmem:[#allocation2] sm:$0xff] (!%p1503_p3), %v1837_v32  ;;  %421 = vst [vmem:[#allocation2 + $0x8] sm:$0xff] (!%p1503_p3), %v1837_v32 }
  0x5a   : > { %419 = sbr.rel (%p1503_p3) target bundleno = 97 (0x61), region = 67  ;;  %422 = vst [vmem:[#allocation2 + $0x10] sm:$0xff] (!%p1503_p3), %v1837_v32  ;;  %423 = vst [vmem:[#allocation2 + $0x18] sm:$0xff] (!%p1503_p3), %v1837_v32 }
  0x5b   : > { %424 = vst [vmem:[#allocation2 + $0x20] sm:$0xff] (!%p1503_p3), %v1837_v32  ;;  %425 = vst [vmem:[#allocation2 + $0x28] sm:$0xff] (!%p1503_p3), %v1837_v32 }
  0x5c   : > { %426 = vst [vmem:[#allocation2 + $0x30] sm:$0xff] (!%p1503_p3), %v1837_v32  ;;  %427 = vst [vmem:[#allocation2 + $0x38] sm:$0xff] (!%p1503_p3), %v1837_v32 }
  0x5d   : > { %428 = vst [vmem:[#allocation2 + $0x40] sm:$0xff] (!%p1503_p3), %v1837_v32  ;;  %429 = vst [vmem:[#allocation2 + $0x48] sm:$0xff] (!%p1503_p3), %v1837_v32 }
  0x5e   : > { %430 = vst [vmem:[#allocation2 + $0x50] sm:$0xff] (!%p1503_p3), %v1837_v32  ;;  %431 = vst [vmem:[#allocation2 + $0x58] sm:$0xff] (!%p1503_p3), %v1837_v32 }
  0x5f   : > { %432 = vst [vmem:[#allocation2 + $0x60] sm:$0xff] (!%p1503_p3), %v1837_v32  ;;  %433 = vst [vmem:[#allocation2 + $0x68] sm:$0xff] (!%p1503_p3), %v1837_v32 }
  0x60   : > { %434 = vst [vmem:[#allocation2 + $0x70] sm:$0xff] (!%p1503_p3), %v1837_v32  ;;  %435 = vst [vmem:[#allocation2 + $0x78] sm:$0xff] (!%p1503_p3), %v1837_v32 }
  0x61 PF: > { %s436_s25 = sshra.s32 %s1818_s28, 7  ;;  %s441_s10 = sand.u32 127, %s1818_s28 }
  0x62   : > { %s438_s14 = sadd.s32 %s1822_s0, %s436_s25 }
  0x63   : > { %s1504_s21 = sshll.u32 %s438_s14, 7 }
  0x64   : > { %s442_s11 = sadd.s32 %s1504_s21, %s441_s10 }
  0x65   : > { %s443_s12 = sld [smem:[#allocation4 + %s442_s11]] }
  0x6b   : > { %p1505_p4 = scmp.eq.s32.totalorder %s443_s12, 0 }
  0x6c   : > { %v546_v33 = vld [vmem:[%s2025_s18 + $0x10] sm:$0xff] (!%p1505_p4)  ;;  %v544_v34 = vld [vmem:[%s2025_s18] sm:$0xff] (!%p1505_p4)  ;;  %s1506_s16 = sshll.u32 (!%p1505_p4), %s1818_s28, 9  ;;  %v1838_v35 = vmov (!%p1505_p4), 0   ;;  %v547_v36 = vld [vmem:[%s2025_s18 + $0x18] sm:$0xff] (!%p1505_p4)  ;;  %s2318_s20 = sld [smem:[#allocation7_spill]] (!%p1505_p4)  ;;  %v706_v18 = vlaneseq (!%p1505_p4) }
  0x6d   : > { %447 = sbr.rel (%p1505_p4) target bundleno = 528 (0x210), region = 71  ;;  %1733 = vset.pattern.permute.xlu1 (!%p1505_p4), %v1838_v35  ;;  %1732 = vset.pattern.permute.xlu0 (!%p1505_p4), %v1838_v35  ;;  %s791_s0 = sshra.s32 (!%p1505_p4), %s1506_s16, 3  ;;  %v545_v37 = vld [vmem:[%s2025_s18 + $0x8] sm:$0xff] (!%p1505_p4)  ;;  %v548_v39 = vld [vmem:[%s2025_s18 + $0x20] sm:$0xff] (!%p1505_p4)  ;;  %v551_v43 = vld [vmem:[%s2025_s18 + $0x38] sm:$0xff] (!%p1505_p4) }
  0x6e   : > { %572 = vperm.xlu1 (!%p1505_p4), %1733, %v546_v33   ;;  %562 = vperm.xlu0 (!%p1505_p4), %1732, %v544_v34   ;;  %s1507_s15 = sshll.u32 (!%p1505_p4), %s791_s0, 2  ;;  %v549_v38 = vld [vmem:[%s2025_s18 + $0x28] sm:$0xff] (!%p1505_p4)  ;;  %v550_v44 = vld [vmem:[%s2025_s18 + $0x30] sm:$0xff] (!%p1505_p4)  ;;  %v552_v50 = vld [vmem:[%s2025_s18 + $0x40] sm:$0xff] (!%p1505_p4)  ;;  %v707_v19 = vshrl.u32 (!%p1505_p4), %v706_v18, 7 }
  0x6f   : > { %v553_v49 = vld [vmem:[%s2025_s18 + $0x48] sm:$0xff] (!%p1505_p4)  ;;  %v555_v55 = vld [vmem:[%s2025_s18 + $0x58] sm:$0xff] (!%p1505_p4)  ;;  %v554_v56 = vld [vmem:[%s2025_s18 + $0x50] sm:$0xff] (!%p1505_p4) }
  0x70   : > { %v557_v61 = vld [vmem:[%s2025_s18 + $0x68] sm:$0xff] (!%p1505_p4)  ;;  %v556_v62 = vld [vmem:[%s2025_s18 + $0x60] sm:$0xff] (!%p1505_p4)  ;;  %v559_v5 = vld [vmem:[%s2025_s18 + $0x78] sm:$0xff] (!%p1505_p4)  ;;  %v712_v25 = vsub.s32 (!%p1505_p4), 1, %v707_v19  ;;  %v720_v26 = vsub.s32 (!%p1505_p4), 3, %v707_v19  ;;  %v708_v32 = vsub.s32 (!%p1505_p4), 0, %v707_v19 }
  0x71   : > { %v558_v6 = vld [vmem:[%s2025_s18 + $0x70] sm:$0xff] (!%p1505_p4)  ;;  %v2099_v20 = vld [vmem:[%s2038_s5 + $0x20] sm:$0xff] (!%p1505_p4)  ;;  %v2102_v21 = vld [vmem:[%s2038_s5 + $0x28] sm:$0xff] (!%p1505_p4)  ;;  %v716_v33 = vsub.s32 (!%p1505_p4), 2, %v707_v19 }
  0x72   : > { %s2052_s26 = scalar_lea.vmem (!%p1505_p4), %s2318_s20, %s1507_s15  ;;  %577 = vperm.xlu1 (!%p1505_p4), %1733, %v547_v36   ;;  %567 = vperm.xlu0 (!%p1505_p4), %1732, %v545_v37   ;;  %v448_v22 = vld [vmem:[%s2038_s5] sm:$0xff] (!%p1505_p4)  ;;  %v449_v23 = vld [vmem:[%s2038_s5 + $0x8] sm:$0xff] (!%p1505_p4)  ;;  %v2107_v24 = vld [vmem:[%s2038_s5 + $0x30] sm:$0xff] (!%p1505_p4)  ;;  %v488_v27 = vunpack.c.l.bf16 (!%p1505_p4), %v2099_v20  ;;  %v489_v28 = vunpack.c.h.bf16 (!%p1505_p4), %v2099_v20  ;;  %v490_v34 = vunpack.c.l.bf16 (!%p1505_p4), %v2102_v21  ;;  %v491_v35 = vunpack.c.h.bf16 (!%p1505_p4), %v2102_v21 }
  0x73   : > { %v1734_v40 = vld [vmem:[%s2052_s26 + $0x40] sm:$0xff] (!%p1505_p4)   ;;  %v1738_v46 = vld [vmem:[%s2052_s26 + $0x48] sm:$0xff] (!%p1505_p4)   ;;  %v1742_v52 = vld [vmem:[%s2052_s26 + $0x50] sm:$0xff] (!%p1505_p4)   ;;  %v480_v36 = vunpack.c.l.bf16 (!%p1505_p4), %v448_v22  ;;  %v482_v37 = vunpack.c.l.bf16 (!%p1505_p4), %v449_v23 }
  0x74   : > { %v1735_v41 = vld [vmem:[%s2052_s26 + $0xc0] sm:$0xff]   ;;  %1545 = vmatprep.subr.bf16.mxu0 %v1734_v40  ;;  %v1739_v47 = vld [vmem:[%s2052_s26 + $0xc8] sm:$0xff]   ;;  %v1743_v53 = vld [vmem:[%s2052_s26 + $0xd0] sm:$0xff]  }
  0x75   : > { %v1736_v42 = vld [vmem:[%s2052_s26] sm:$0xff]   ;;  %1609 = vmatprep.subr.bf16.mxu1 %v1735_v41  ;;  %v1740_v48 = vld [vmem:[%s2052_s26 + $0x8] sm:$0xff]   ;;  %v1744_v54 = vld [vmem:[%s2052_s26 + $0x10] sm:$0xff]  }
  0x76   : > { %v1737_v45 = vld [vmem:[%s2052_s26 + $0x80] sm:$0xff]   ;;  %587 = vperm.xlu1 %1733, %v549_v38   ;;  %582 = vperm.xlu0 %1732, %v548_v39   ;;  %v1741_v51 = vld [vmem:[%s2052_s26 + $0x88] sm:$0xff]   ;;  %v1745_v57 = vld [vmem:[%s2052_s26 + $0x90] sm:$0xff]  }
  0x77   : > { %1546 = vmatpush3.bf16.msra.mxu0 %v1736_v42  ;;  %1610 = vmatpush3.bf16.msra.mxu1 %v1737_v45  ;;  %v1746_v58 = vld [vmem:[%s2052_s26 + $0x58] sm:$0xff]   ;;  %v1750_v0 = vld [vmem:[%s2052_s26 + $0x60] sm:$0xff]   ;;  %v1754_v4 = vld [vmem:[%s2052_s26 + $0x68] sm:$0xff]   ;;  %v492_v42 = vunpack.c.l.bf16 %v2107_v24 }
  0x78   : > { %1547 = vmatprep.subr.bf16.mxu0 %v1738_v46  ;;  %1611 = vmatprep.subr.bf16.mxu1 %v1739_v47  ;;  %v1747_v59 = vld [vmem:[%s2052_s26 + $0xd8] sm:$0xff]   ;;  %v1751_v1 = vld [vmem:[%s2052_s26 + $0xe0] sm:$0xff]   ;;  %v1755_v7 = vld [vmem:[%s2052_s26 + $0xe8] sm:$0xff]   ;;  %v483_v46 = vunpack.c.h.bf16 %v449_v23 }
  0x79   : > { %v1748_v60 = vld [vmem:[%s2052_s26 + $0x18] sm:$0xff]   ;;  %v1752_v2 = vld [vmem:[%s2052_s26 + $0x20] sm:$0xff]   ;;  %v1756_v8 = vld [vmem:[%s2052_s26 + $0x28] sm:$0xff]  }
  0x7a   : > { %597 = vperm.xlu1 %1733, %v551_v43   ;;  %592 = vperm.xlu0 %1732, %v550_v44   ;;  %v1749_v63 = vld [vmem:[%s2052_s26 + $0x98] sm:$0xff]   ;;  %v1753_v3 = vld [vmem:[%s2052_s26 + $0xa0] sm:$0xff]   ;;  %v1757_v9 = vld [vmem:[%s2052_s26 + $0xa8] sm:$0xff]   ;;  %v493_v43 = vunpack.c.h.bf16 %v2107_v24  ;;  %v481_v44 = vunpack.c.h.bf16 %v448_v22 }
  0x7b   : > { %1548 = vmatpush3.bf16.msra.mxu0 %v1740_v48  ;;  %1612 = vmatpush3.bf16.msra.mxu1 %v1741_v51  ;;  %v1758_v10 = vld [vmem:[%s2052_s26 + $0x70] sm:$0xff]   ;;  %v1762_v14 = vld [vmem:[%s2052_s26 + $0x78] sm:$0xff]   ;;  %v2122_v39 = vld [vmem:[%s2038_s5 + $0x40] sm:$0xff] }
  0x7c   : > { %1549 = vmatprep.subr.bf16.mxu0 %v1742_v52  ;;  %1613 = vmatprep.subr.bf16.mxu1 %v1743_v53  ;;  %v1759_v11 = vld [vmem:[%s2052_s26 + $0xf0] sm:$0xff]   ;;  %v1763_v15 = vld [vmem:[%s2052_s26 + $0xf8] sm:$0xff]   ;;  %v704_v45 = vld [vmem:[%s407_s24] sm:$0xf]  ;;  %v497_v52 = vunpack.c.h.bf16 %v2122_v39 }
  0x7d   : > { %v1760_v12 = vld [vmem:[%s2052_s26 + $0x30] sm:$0xff]   ;;  %v1764_v16 = vld [vmem:[%s2052_s26 + $0x38] sm:$0xff]  }
  0x7e   : > { %607 = vperm.xlu1 %1733, %v553_v49   ;;  %602 = vperm.xlu0 %1732, %v552_v50   ;;  %v1761_v13 = vld [vmem:[%s2052_s26 + $0xb0] sm:$0xff]   ;;  %v1765_v17 = vld [vmem:[%s2052_s26 + $0xb8] sm:$0xff]  }
  0x7f   : > { %1550 = vmatpush3.bf16.msra.mxu0 %v1744_v54  ;;  %1614 = vmatpush3.bf16.msra.mxu1 %v1745_v57  ;;  %v2112_v29 = vld [vmem:[%s2038_s5 + $0x38] sm:$0xff]  ;;  %v450_v30 = vld [vmem:[%s2038_s5 + $0x10] sm:$0xff]  ;;  %v2135_v57 = vrot.slane %v704_v45, %v712_v25 }
  0x80   : > { %1551 = vmatprep.subr.bf16.mxu0 %v1746_v58  ;;  %1615 = vmatprep.subr.bf16.mxu1 %v1747_v59  ;;  %v451_v31 = vld [vmem:[%s2038_s5 + $0x18] sm:$0xff]  ;;  %v2119_v38 = vld [vmem:[%s2038_s5 + $0x50] sm:$0xff]  ;;  %v494_v47 = vunpack.c.l.bf16 %v2112_v29  ;;  %v495_v48 = vunpack.c.h.bf16 %v2112_v29  ;;  %v484_v49 = vunpack.c.l.bf16 %v450_v30  ;;  %v485_v53 = vunpack.c.h.bf16 %v450_v30 }
  0x81   : > { %v486_v50 = vunpack.c.l.bf16 %v451_v31  ;;  %v501_v51 = vunpack.c.h.bf16 %v2119_v38  ;;  %v487_v54 = vunpack.c.h.bf16 %v451_v31  ;;  %v2137_v58 = vrot.slane %v704_v45, %v720_v26 }
  0x82   : > { %617 = vperm.xlu1 %1733, %v555_v55   ;;  %612 = vperm.xlu0 %1732, %v554_v56  }
  0x83   : > { %1552 = vmatpush3.bf16.msra.mxu0 %v1748_v60  ;;  %1616 = vmatpush3.bf16.msra.mxu1 %v1749_v63  ;;  %v2139_v63 = vrot.slane %v704_v45, %v708_v32 }
  0x84   : > { %1553 = vmatprep.subr.bf16.mxu0 %v1750_v0  ;;  %1617 = vmatprep.subr.bf16.mxu1 %v1751_v1  ;;  %v2141_v0 = vrot.slane %v704_v45, %v716_v33 }
  0x86   : > { %627 = vperm.xlu1 %1733, %v557_v61   ;;  %622 = vperm.xlu0 %1732, %v556_v62  }
  0x87   : > { %1554 = vmatpush3.bf16.msra.mxu0 %v1752_v2  ;;  %1618 = vmatpush3.bf16.msra.mxu1 %v1753_v3 }
  0x88   : > { %1555 = vmatprep.subr.bf16.mxu0 %v1754_v4  ;;  %1619 = vmatprep.subr.bf16.mxu1 %v1755_v7 }
  0x8a   : > { %637 = vperm.xlu1 %1733, %v559_v5   ;;  %632 = vperm.xlu0 %1732, %v558_v6  }
  0x8b   : > { %1556 = vmatpush3.bf16.msra.mxu0 %v1756_v8  ;;  %1620 = vmatpush3.bf16.msra.mxu1 %v1757_v9  ;;  %v2144_v9 = vld [vmem:[%s2038_s5 + $0x58] sm:$0xff] }
  0x8c   : > { %1557 = vmatprep.subr.bf16.mxu0 %v1758_v10  ;;  %1621 = vmatprep.subr.bf16.mxu1 %v1759_v11  ;;  %v2147_v10 = vld [vmem:[%s2038_s5 + $0x48] sm:$0xff]  ;;  %v503_v25 = vunpack.c.h.bf16 %v2144_v9 }
  0x8f   : > { %1558 = vmatpush3.bf16.msra.mxu0 %v1760_v12  ;;  %1622 = vmatpush3.bf16.msra.mxu1 %v1761_v13 }
  0x90   : > { %1559 = vmatprep.subr.bf16.mxu0 %v1762_v14  ;;  %1623 = vmatprep.subr.bf16.mxu1 %v1763_v15 }
  0x93   : > { %1560 = vmatpush3.bf16.msra.mxu0 %v1764_v16  ;;  %1624 = vmatpush3.bf16.msra.mxu1 %v1765_v17 }
  0xed   : > { %v573_v40 = vpop.permute.xlu1 %572  ;;  %v563_v41 = vpop.permute.xlu0 %562 }
  0xee   : > { %v649_v55 = vmul.f32 %v573_v40, %v489_v28  ;;  %v651_v56 = vmul.f32 %v573_v40, %v491_v35  ;;  %v640_v59 = vmul.f32 %v563_v41, %v480_v36  ;;  %v642_v60 = vmul.f32 %v563_v41, %v482_v37 }
  0xef   : > { %v641_v3 = vmul.f32 %v563_v41, %v481_v44  ;;  %v643_v4 = vmul.f32 %v563_v41, %v483_v46  ;;  %v648_v23 = vmul.f32 %v573_v40, %v488_v27  ;;  %v499_v28 = vunpack.c.h.bf16 %v2147_v10 }
  0xf0   : > { %v735_v11 = vmul.f32 %v2135_v57, %v649_v55  ;;  %v737_v13 = vmul.f32 %v2137_v58, %v651_v56  ;;  %v726_v21 = vmul.f32 %v2139_v63, %v640_v59  ;;  %v728_v22 = vmul.f32 %v2141_v0, %v642_v60 }
  0xf1   : > { %v578_v61 = vpop.permute.xlu1 %577  ;;  %v568_v62 = vpop.permute.xlu0 %567  ;;  %v727_v19 = vmul.f32 %v2135_v57, %v641_v3  ;;  %v729_v20 = vmul.f32 %v2137_v58, %v643_v4  ;;  %v650_v33 = vmul.f32 %v573_v40, %v490_v34  ;;  %v500_v46 = vunpack.c.l.bf16 %v2119_v38 }
  0xf2   : > { %v653_v1 = vmul.f32 %v578_v61, %v493_v43  ;;  %v655_v2 = vmul.f32 %v578_v61, %v495_v48  ;;  %v644_v5 = vmul.f32 %v568_v62, %v484_v49  ;;  %v646_v6 = vmul.f32 %v568_v62, %v486_v50  ;;  %v462_v49 = vld [vmem:[%s2038_s5 + $0x70] sm:$0xff]  ;;  %v2167_v50 = vld [vmem:[%s2038_s5 + $0x60] sm:$0xff] }
  0xf3   : > { %v645_v7 = vmul.f32 %v568_v62, %v485_v53  ;;  %v647_v8 = vmul.f32 %v568_v62, %v487_v54  ;;  %v652_v35 = vmul.f32 %v578_v61, %v492_v42  ;;  %v654_v41 = vmul.f32 %v578_v61, %v494_v47  ;;  %v463_v42 = vld [vmem:[%s2038_s5 + $0x78] sm:$0xff]  ;;  %v461_v47 = vld [vmem:[%s2038_s5 + $0x68] sm:$0xff] }
  0xf4   : > { %v739_v12 = vmul.f32 %v2135_v57, %v653_v1  ;;  %v741_v14 = vmul.f32 %v2137_v58, %v655_v2  ;;  %v730_v17 = vmul.f32 %v2139_v63, %v644_v5  ;;  %v732_v18 = vmul.f32 %v2141_v0, %v646_v6 }
  0xf5   : > { %v731_v15 = vmul.f32 %v2135_v57, %v645_v7  ;;  %v733_v16 = vmul.f32 %v2137_v58, %v647_v8  ;;  %v588_v24 = vpop.permute.xlu1 %587  ;;  %v583_v26 = vpop.permute.xlu0 %582  ;;  %v502_v48 = vunpack.c.l.bf16 %v2144_v9  ;;  %v496_v34 = vunpack.c.l.bf16 %v2122_v39 }
  0xf6   : > { %v875_v31 = vpack.c.bf16 %v730_v17, %v726_v21  ;;  %v877_v32 = vpack.c.bf16 %v732_v18, %v728_v22  ;;  %v880_v36 = vpack.c.bf16 %v739_v12, %v735_v11  ;;  %v882_v37 = vpack.c.bf16 %v741_v14, %v737_v13  ;;  %v2183_v12 = vld [vmem:[%s2038_s5 + $0x90] sm:$0xff]  ;;  %v2186_v13 = vld [vmem:[%s2038_s5 + $0x80] sm:$0xff] }
  0xf7   : > { %v876_v29 = vpack.c.bf16 %v731_v15, %v727_v19  ;;  %v878_v30 = vpack.c.bf16 %v733_v16, %v729_v20  ;;  %v661_v43 = vmul.f32 %v588_v24, %v501_v51  ;;  %v657_v27 = vmul.f32 %v583_v26, %v497_v52  ;;  %v467_v19 = vld [vmem:[%s2038_s5 + $0x98] sm:$0xff]  ;;  %v465_v20 = vld [vmem:[%s2038_s5 + $0x88] sm:$0xff] }
  0xf8   : > { %v663_v44 = vmul.f32 %v588_v24, %v503_v25  ;;  %v659_v45 = vmul.f32 %v583_v26, %v499_v28  ;;  %v498_v40 = vunpack.c.l.bf16 %v2147_v10  ;;  %v734_v51 = vmul.f32 %v2139_v63, %v648_v23 }
  0xf9   : > { %1131 = vmatprep.mubr.bf16.mxu0 %v876_v29  ;;  %1228 = vmatprep.mubr.bf16.mxu1 %v878_v30  ;;  %v738_v52 = vmul.f32 %v2139_v63, %v652_v35  ;;  %v736_v38 = vmul.f32 %v2141_v0, %v650_v33  ;;  %v740_v53 = vmul.f32 %v2141_v0, %v654_v41  ;;  %v509_v56 = vunpack.c.h.bf16 %v462_v49  ;;  %v598_v61 = vpop.permute.xlu1 %597  ;;  %v593_v1 = vpop.permute.xlu0 %592 }
  0xfa   : > { %1132 = vmatmul.mubr.bf16.vlgmr.msra.gmra.mrb[0].mxu0 %v875_v31  ;;  %1229 = vmatmul.mubr.bf16.vlgmr.msra.gmra.mrb[0].mxu1 %v877_v32  ;;  %v743_v54 = vmul.f32 %v2135_v57, %v657_v27  ;;  %v747_v55 = vmul.f32 %v2135_v57, %v661_v43  ;;  %v505_v39 = vunpack.c.h.bf16 %v2167_v50  ;;  %v745_v59 = vmul.f32 %v2137_v58, %v659_v45 }
  0xfb   : > { %1139 = vmatprep.mubr.bf16.mxu0 %v880_v36  ;;  %1236 = vmatprep.mubr.bf16.mxu1 %v882_v37  ;;  %v749_v60 = vmul.f32 %v2137_v58, %v663_v44  ;;  %v511_v62 = vunpack.c.h.bf16 %v463_v42  ;;  %v507_v2 = vunpack.c.h.bf16 %v461_v47  ;;  %v660_v3 = vmul.f32 %v588_v24, %v500_v46 }
  0xfc   : > { %v656_v4 = vmul.f32 %v583_v26, %v496_v34  ;;  %v879_v5 = vpack.c.bf16 %v738_v52, %v734_v51  ;;  %v662_v6 = vmul.f32 %v588_v24, %v502_v48  ;;  %v658_v7 = vmul.f32 %v583_v26, %v498_v40  ;;  %v2205_v34 = vld [vmem:[%s2038_s5 + $0xa0] sm:$0xff] }
  0xfd   : > { %v881_v8 = vpack.c.bf16 %v740_v53, %v736_v38  ;;  %v884_v9 = vpack.c.bf16 %v747_v55, %v743_v54  ;;  %v669_v10 = vmul.f32 %v598_v61, %v509_v56  ;;  %v665_v11 = vmul.f32 %v593_v1, %v505_v39  ;;  %v608_v30 = vpop.permute.xlu1 %607  ;;  %v603_v32 = vpop.permute.xlu0 %602  ;;  %v471_v55 = vld [vmem:[%s2038_s5 + $0xb8] sm:$0xff]  ;;  %v469_v56 = vld [vmem:[%s2038_s5 + $0xa8] sm:$0xff] }
  0xfe   : > { %v886_v14 = vpack.c.bf16 %v749_v60, %v745_v59  ;;  %v508_v15 = vunpack.c.l.bf16 %v462_v49  ;;  %v510_v16 = vunpack.c.l.bf16 %v463_v42  ;;  %v671_v17 = vmul.f32 %v598_v61, %v511_v62 }
  0xff   : > { %v667_v18 = vmul.f32 %v593_v1, %v507_v2  ;;  %v504_v21 = vunpack.c.l.bf16 %v2167_v50  ;;  %v506_v22 = vunpack.c.l.bf16 %v461_v47  ;;  %v742_v23 = vmul.f32 %v2139_v63, %v656_v4  ;;  %v2202_v50 = vld [vmem:[%s2038_s5 + $0xb0] sm:$0xff] }
 0x100   : > { %v746_v24 = vmul.f32 %v2139_v63, %v660_v3  ;;  %v517_v25 = vunpack.c.h.bf16 %v2183_v12  ;;  %v513_v26 = vunpack.c.h.bf16 %v2186_v13  ;;  %v744_v28 = vmul.f32 %v2141_v0, %v658_v7 }
 0x101   : > { %v748_v29 = vmul.f32 %v2141_v0, %v662_v6  ;;  %v519_v31 = vunpack.c.h.bf16 %v467_v19  ;;  %v515_v33 = vunpack.c.h.bf16 %v465_v20  ;;  %v751_v35 = vmul.f32 %v2135_v57, %v665_v11  ;;  %v613_v7 = vpop.permute.xlu0 %612 }
 0x102   : > { %1140 = vmatmul.mubr.bf16.gmra.mrb[4].mxu0 %v879_v5  ;;  %1237 = vmatmul.mubr.bf16.gmra.mrb[4].mxu1 %v881_v8  ;;  %v755_v36 = vmul.f32 %v2135_v57, %v669_v10  ;;  %v753_v37 = vmul.f32 %v2137_v58, %v667_v18  ;;  %v757_v41 = vmul.f32 %v2137_v58, %v671_v17  ;;  %v516_v42 = vunpack.c.l.bf16 %v2183_v12  ;;  %v618_v5 = vpop.permute.xlu1 %617  ;;  %v2222_v18 = vld [vmem:[%s2038_s5 + $0xd0] sm:$0xff] }
 0x103   : > { %1147 = vmatprep.mubr.bf16.mxu0 %v884_v9  ;;  %1244 = vmatprep.mubr.bf16.mxu1 %v886_v14  ;;  %v668_v43 = vmul.f32 %v598_v61, %v508_v15  ;;  %v670_v27 = vmul.f32 %v598_v61, %v510_v16  ;;  %v664_v44 = vmul.f32 %v593_v1, %v504_v21  ;;  %v518_v38 = vunpack.c.l.bf16 %v467_v19  ;;  %v2225_v19 = vld [vmem:[%s2038_s5 + $0xc0] sm:$0xff] }
 0x104   : > { %v883_v45 = vpack.c.bf16 %v746_v24, %v742_v23  ;;  %v666_v46 = vmul.f32 %v593_v1, %v506_v22  ;;  %v677_v48 = vmul.f32 %v608_v30, %v517_v25  ;;  %v673_v49 = vmul.f32 %v603_v32, %v513_v26 }
 0x105   : > { %v885_v40 = vpack.c.bf16 %v748_v29, %v744_v28  ;;  %v679_v47 = vmul.f32 %v608_v30, %v519_v31  ;;  %v675_v51 = vmul.f32 %v603_v32, %v515_v33  ;;  %v888_v52 = vpack.c.bf16 %v755_v36, %v751_v35  ;;  %v473_v31 = vld [vmem:[%s2038_s5 + $0xc8] sm:$0xff] }
 0x106   : > { %v512_v53 = vunpack.c.l.bf16 %v2186_v13  ;;  %v514_v54 = vunpack.c.l.bf16 %v465_v20  ;;  %v890_v39 = vpack.c.bf16 %v757_v41, %v753_v37  ;;  %v525_v59 = vunpack.c.h.bf16 %v2202_v50 }
 0x107   : > { %v521_v60 = vunpack.c.h.bf16 %v2205_v34  ;;  %v750_v61 = vmul.f32 %v2139_v63, %v664_v44  ;;  %v754_v62 = vmul.f32 %v2139_v63, %v668_v43  ;;  %v752_v1 = vmul.f32 %v2141_v0, %v666_v46  ;;  %v628_v44 = vpop.permute.xlu1 %627  ;;  %v623_v46 = vpop.permute.xlu0 %622 }
 0x108   : > { %v756_v2 = vmul.f32 %v2141_v0, %v670_v27  ;;  %v759_v3 = vmul.f32 %v2135_v57, %v673_v49  ;;  %v763_v4 = vmul.f32 %v2135_v57, %v677_v48  ;;  %v527_v6 = vunpack.c.h.bf16 %v471_v55 }
 0x109   : > { %v523_v8 = vunpack.c.h.bf16 %v469_v56  ;;  %v761_v9 = vmul.f32 %v2137_v58, %v675_v51  ;;  %v765_v10 = vmul.f32 %v2137_v58, %v679_v47  ;;  %v676_v11 = vmul.f32 %v608_v30, %v516_v42 }
 0x10a   : > { %1148 = vmatmul.mubr.bf16.gmra.mrb[8].mxu0 %v883_v45  ;;  %1245 = vmatmul.mubr.bf16.gmra.mrb[8].mxu1 %v885_v40  ;;  %v678_v12 = vmul.f32 %v608_v30, %v518_v38  ;;  %v672_v13 = vmul.f32 %v603_v32, %v512_v53  ;;  %v674_v14 = vmul.f32 %v603_v32, %v514_v54  ;;  %v524_v25 = vunpack.c.l.bf16 %v2202_v50  ;;  %v475_v30 = vld [vmem:[%s2038_s5 + $0xd8] sm:$0xff]  ;;  %v478_v53 = vld [vmem:[%s2038_s5 + $0xf0] sm:$0xff]  ;;  %v476_v54 = vld [vmem:[%s2038_s5 + $0xe0] sm:$0xff] }
 0x10b   : > { %1155 = vmatprep.mubr.bf16.mxu0 %v888_v52  ;;  %1252 = vmatprep.mubr.bf16.mxu1 %v890_v39  ;;  %v887_v15 = vpack.c.bf16 %v754_v62, %v750_v61  ;;  %v685_v16 = vmul.f32 %v618_v5, %v525_v59  ;;  %v681_v17 = vmul.f32 %v613_v7, %v521_v60  ;;  %v526_v26 = vunpack.c.l.bf16 %v471_v55 }
 0x10c   : > { %v889_v20 = vpack.c.bf16 %v756_v2, %v752_v1  ;;  %v892_v21 = vpack.c.bf16 %v763_v4, %v759_v3  ;;  %v687_v22 = vmul.f32 %v618_v5, %v527_v6  ;;  %v683_v23 = vmul.f32 %v613_v7, %v523_v8  ;;  %v479_v3 = vld [vmem:[%s2038_s5 + $0xf8] sm:$0xff]  ;;  %v477_v4 = vld [vmem:[%s2038_s5 + $0xe8] sm:$0xff] }
 0x10d   : > { %v894_v24 = vpack.c.bf16 %v765_v10, %v761_v9  ;;  %v520_v28 = vunpack.c.l.bf16 %v2205_v34  ;;  %v522_v29 = vunpack.c.l.bf16 %v469_v56  ;;  %v533_v32 = vunpack.c.h.bf16 %v2222_v18 }
 0x10e   : > { %v529_v33 = vunpack.c.h.bf16 %v2225_v19  ;;  %v758_v35 = vmul.f32 %v2139_v63, %v672_v13  ;;  %v762_v36 = vmul.f32 %v2139_v63, %v676_v11  ;;  %v760_v37 = vmul.f32 %v2141_v0, %v674_v14  ;;  %v638_v13 = vpop.permute.xlu1 %637 }
 0x10f   : > { %v764_v41 = vmul.f32 %v2141_v0, %v678_v12  ;;  %v767_v43 = vmul.f32 %v2135_v57, %v681_v17  ;;  %v771_v27 = vmul.f32 %v2135_v57, %v685_v16  ;;  %v535_v45 = vunpack.c.h.bf16 %v475_v30 }
 0x110   : > { %v531_v48 = vunpack.c.h.bf16 %v473_v31  ;;  %v769_v49 = vmul.f32 %v2137_v58, %v683_v23  ;;  %v773_v50 = vmul.f32 %v2137_v58, %v687_v22  ;;  %v684_v34 = vmul.f32 %v618_v5, %v524_v25 }
 0x111   : > { %v686_v40 = vmul.f32 %v618_v5, %v526_v26  ;;  %v680_v42 = vmul.f32 %v613_v7, %v520_v28  ;;  %v682_v47 = vmul.f32 %v613_v7, %v522_v29  ;;  %v891_v51 = vpack.c.bf16 %v762_v36, %v758_v35 }
 0x112   : > { %1156 = vmatmul.mubr.bf16.gmra.mrb[12].mxu0 %v887_v15  ;;  %1253 = vmatmul.mubr.bf16.gmra.mrb[12].mxu1 %v889_v20  ;;  %v693_v52 = vmul.f32 %v628_v44, %v533_v32  ;;  %v689_v38 = vmul.f32 %v623_v46, %v529_v33  ;;  %v893_v55 = vpack.c.bf16 %v764_v41, %v760_v37  ;;  %v532_v61 = vunpack.c.l.bf16 %v2222_v18  ;;  %v633_v15 = vpop.permute.xlu0 %632 }
 0x113   : > { %1163 = vmatprep.mubr.bf16.mxu0 %v892_v21  ;;  %1260 = vmatprep.mubr.bf16.mxu1 %v894_v24  ;;  %v896_v56 = vpack.c.bf16 %v771_v27, %v767_v43  ;;  %v695_v39 = vmul.f32 %v628_v44, %v535_v45  ;;  %v691_v59 = vmul.f32 %v623_v46, %v531_v48  ;;  %v534_v62 = vunpack.c.l.bf16 %v475_v30 }
 0x114   : > { %v898_v60 = vpack.c.bf16 %v773_v50, %v769_v49  ;;  %v528_v1 = vunpack.c.l.bf16 %v2225_v19  ;;  %v530_v2 = vunpack.c.l.bf16 %v473_v31  ;;  %v541_v5 = vunpack.c.h.bf16 %v478_v53 }
 0x115   : > { %v537_v6 = vunpack.c.h.bf16 %v476_v54  ;;  %v766_v7 = vmul.f32 %v2139_v63, %v680_v42  ;;  %v770_v8 = vmul.f32 %v2139_v63, %v684_v34  ;;  %v768_v9 = vmul.f32 %v2141_v0, %v682_v47 }
 0x116   : > { %v772_v10 = vmul.f32 %v2141_v0, %v686_v40  ;;  %v775_v11 = vmul.f32 %v2135_v57, %v689_v38  ;;  %v779_v12 = vmul.f32 %v2135_v57, %v693_v52  ;;  %v543_v14 = vunpack.c.h.bf16 %v479_v3 }
 0x117   : > { %v539_v16 = vunpack.c.h.bf16 %v477_v4  ;;  %v777_v17 = vmul.f32 %v2137_v58, %v691_v59  ;;  %v781_v18 = vmul.f32 %v2137_v58, %v695_v39  ;;  %v692_v19 = vmul.f32 %v628_v44, %v532_v61 }
 0x118   : > { %v694_v20 = vmul.f32 %v628_v44, %v534_v62  ;;  %v688_v21 = vmul.f32 %v623_v46, %v528_v1  ;;  %v690_v22 = vmul.f32 %v623_v46, %v530_v2  ;;  %v895_v23 = vpack.c.bf16 %v770_v8, %v766_v7  ;;  %v860_v8 = vld [vmem:[#allocation2 + $0x8] sm:$0xff] }
 0x119   : > { %v701_v24 = vmul.f32 %v638_v13, %v541_v5  ;;  %v697_v25 = vmul.f32 %v633_v15, %v537_v6  ;;  %v897_v26 = vpack.c.bf16 %v772_v10, %v768_v9  ;;  %v900_v28 = vpack.c.bf16 %v779_v12, %v775_v11 }
 0x11a   : > { %1164 = vmatmul.mubr.bf16.gmra.mrb[16].mxu0 %v891_v51  ;;  %1261 = vmatmul.mubr.bf16.gmra.mrb[16].mxu1 %v893_v55  ;;  %v703_v29 = vmul.f32 %v638_v13, %v543_v14  ;;  %v699_v30 = vmul.f32 %v633_v15, %v539_v16  ;;  %v902_v31 = vpack.c.bf16 %v781_v18, %v777_v17  ;;  %v540_v32 = vunpack.c.l.bf16 %v478_v53 }
 0x11b   : > { %1171 = vmatprep.mubr.bf16.mxu0 %v896_v56  ;;  %1268 = vmatprep.mubr.bf16.mxu1 %v898_v60  ;;  %v542_v33 = vunpack.c.l.bf16 %v479_v3  ;;  %v536_v35 = vunpack.c.l.bf16 %v476_v54  ;;  %v538_v36 = vunpack.c.l.bf16 %v477_v4  ;;  %v774_v37 = vmul.f32 %v2139_v63, %v688_v21  ;;  %v859_v4 = vld [vmem:[#allocation2] sm:$0xff] }
 0x11c   : > { %v778_v41 = vmul.f32 %v2139_v63, %v692_v19  ;;  %v787_v43 = vmul.f32 %v2135_v57, %v701_v24  ;;  %v783_v27 = vmul.f32 %v2135_v57, %v697_v25  ;;  %v776_v44 = vmul.f32 %v2141_v0, %v690_v22  ;;  %v862_v25 = vld [vmem:[#allocation2 + $0x18] sm:$0xff] }
 0x11d   : > { %v780_v45 = vmul.f32 %v2141_v0, %v694_v20  ;;  %v789_v46 = vmul.f32 %v2137_v58, %v703_v29  ;;  %v785_v48 = vmul.f32 %v2137_v58, %v699_v30  ;;  %v700_v49 = vmul.f32 %v638_v13, %v540_v32  ;;  %v861_v20 = vld [vmem:[#allocation2 + $0x10] sm:$0xff] }
 0x11e   : > { %v696_v50 = vmul.f32 %v633_v15, %v536_v35  ;;  %v899_v34 = vpack.c.bf16 %v778_v41, %v774_v37  ;;  %v702_v40 = vmul.f32 %v638_v13, %v542_v33  ;;  %v698_v42 = vmul.f32 %v633_v15, %v538_v36 }
 0x11f   : > { %v901_v47 = vpack.c.bf16 %v780_v45, %v776_v44  ;;  %v904_v51 = vpack.c.bf16 %v787_v43, %v783_v27  ;;  %v906_v52 = vpack.c.bf16 %v789_v46, %v785_v48  ;;  %v786_v57 = vmul.f32 %v2139_v63, %v700_v49  ;;  %v863_v27 = vld [vmem:[#allocation2 + $0x20] sm:$0xff]  ;;  %v864_v49 = vld [vmem:[#allocation2 + $0x28] sm:$0xff] }
 0x120   : > { %v782_v38 = vmul.f32 %v2139_v63, %v696_v50  ;;  %v788_v53 = vmul.f32 %v2141_v0, %v702_v40  ;;  %v784_v58 = vmul.f32 %v2141_v0, %v698_v42 }
 0x122   : > { %1172 = vmatmul.mubr.bf16.gmra.mrb[20].mxu0 %v895_v23  ;;  %1269 = vmatmul.mubr.bf16.gmra.mrb[20].mxu1 %v897_v26  ;;  %v903_v54 = vpack.c.bf16 %v786_v57, %v782_v38  ;;  %v905_v55 = vpack.c.bf16 %v788_v53, %v784_v58 }
 0x123   : > { %1179 = vmatprep.mubr.bf16.mxu0 %v900_v28  ;;  %1276 = vmatprep.mubr.bf16.mxu1 %v902_v31 }
 0x12a   : > { %1180 = vmatmul.mubr.bf16.gmra.mrb[24].mxu0 %v899_v34  ;;  %1277 = vmatmul.mubr.bf16.gmra.mrb[24].mxu1 %v901_v47 }
 0x12b   : > { %1187 = vmatprep.mubr.bf16.mxu0 %v904_v51  ;;  %1284 = vmatprep.mubr.bf16.mxu1 %v906_v52 }
 0x132   : > { %1188 = vmatmul.mubr.bf16.gmra.mrb[28].mxu0 %v903_v54  ;;  %1285 = vmatmul.mubr.bf16.gmra.mrb[28].mxu1 %v905_v55  ;;  %v865_v55 = vld [vmem:[#allocation2 + $0x30] sm:$0xff] }
 0x1cd   : > { %v1561_v56 = vpop.f32.mrb[0].mxu0  ;;  %v1625_v39 = vpop.f32.mrb[0].mxu1 }
 0x1ce   : > { %v1562_v59 = vpop.f32.mrb[1].mxu0  ;;  %v1626_v61 = vpop.f32.mrb[1].mxu1 }
 0x1cf   : > { %v1563_v60 = vadd.f32 %v1562_v59, %v1561_v56  ;;  %v1564_v62 = vpop.f32.mrb[2].mxu0  ;;  %v1627_v1 = vadd.f32 %v1626_v61, %v1625_v39  ;;  %v1628_v2 = vpop.f32.mrb[2].mxu1  ;;  %v866_v61 = vld [vmem:[#allocation2 + $0x38] sm:$0xff] }
 0x1d0   : > { %v1565_v3 = vpop.f32.mrb[3].mxu0  ;;  %v1629_v5 = vpop.f32.mrb[3].mxu1 }
 0x1d1   : > { %v1566_v63 = vadd.f32 %v1565_v3, %v1564_v62  ;;  %v1231_v6 = vadd.f32 %v1627_v1, %v1563_v60  ;;  %v1630_v7 = vadd.f32 %v1629_v5, %v1628_v2 }
 0x1d3   : > { %v1293_v0 = vadd.f32 %v1231_v6, %v859_v4  ;;  %v1234_v9 = vadd.f32 %v1630_v7, %v1566_v63 }
 0x1d5   : > { %v1567_v10 = vpop.f32.mrb[4].mxu0  ;;  %1309 = vst [vmem:[#allocation2] sm:$0xff] %v1293_v0  ;;  %v1294_v11 = vadd.f32 %v1234_v9, %v860_v8  ;;  %v1631_v12 = vpop.f32.mrb[4].mxu1 }
 0x1d6   : > { %v1568_v13 = vpop.f32.mrb[5].mxu0  ;;  %v1632_v15 = vpop.f32.mrb[5].mxu1 }
 0x1d7   : > { %v1569_v14 = vadd.f32 %v1568_v13, %v1567_v10  ;;  %v1570_v16 = vpop.f32.mrb[6].mxu0  ;;  %1310 = vst [vmem:[#allocation2 + $0x8] sm:$0xff] %v1294_v11  ;;  %v1633_v17 = vadd.f32 %v1632_v15, %v1631_v12  ;;  %v1634_v18 = vpop.f32.mrb[6].mxu1  ;;  %v867_v10 = vld [vmem:[#allocation2 + $0x40] sm:$0xff]  ;;  %v868_v15 = vld [vmem:[#allocation2 + $0x48] sm:$0xff] }
 0x1d8   : > { %v1571_v19 = vpop.f32.mrb[7].mxu0  ;;  %v1635_v22 = vpop.f32.mrb[7].mxu1 }
 0x1d9   : > { %v1572_v21 = vadd.f32 %v1571_v19, %v1570_v16  ;;  %v1239_v23 = vadd.f32 %v1633_v17, %v1569_v14  ;;  %v1636_v24 = vadd.f32 %v1635_v22, %v1634_v18 }
 0x1db   : > { %v1295_v26 = vadd.f32 %v1239_v23, %v861_v20  ;;  %v1242_v28 = vadd.f32 %v1636_v24, %v1572_v21 }
 0x1dd   : > { %v1573_v29 = vpop.f32.mrb[8].mxu0  ;;  %1311 = vst [vmem:[#allocation2 + $0x10] sm:$0xff] %v1295_v26  ;;  %v1296_v30 = vadd.f32 %v1242_v28, %v862_v25  ;;  %v1637_v31 = vpop.f32.mrb[8].mxu1 }
 0x1de   : > { %v1574_v32 = vpop.f32.mrb[9].mxu0  ;;  %v1638_v35 = vpop.f32.mrb[9].mxu1 }
 0x1df   : > { %v1575_v33 = vadd.f32 %v1574_v32, %v1573_v29  ;;  %v1576_v36 = vpop.f32.mrb[10].mxu0  ;;  %1312 = vst [vmem:[#allocation2 + $0x18] sm:$0xff] %v1296_v30  ;;  %v1639_v37 = vadd.f32 %v1638_v35, %v1637_v31  ;;  %v1640_v41 = vpop.f32.mrb[10].mxu1  ;;  %v869_v29 = vld [vmem:[#allocation2 + $0x50] sm:$0xff]  ;;  %v870_v35 = vld [vmem:[#allocation2 + $0x58] sm:$0xff] }
 0x1e0   : > { %v1577_v43 = vpop.f32.mrb[11].mxu0  ;;  %v1641_v45 = vpop.f32.mrb[11].mxu1 }
 0x1e1   : > { %v1578_v44 = vadd.f32 %v1577_v43, %v1576_v36  ;;  %v1247_v46 = vadd.f32 %v1639_v37, %v1575_v33  ;;  %v1642_v48 = vadd.f32 %v1641_v45, %v1640_v41 }
 0x1e3   : > { %v1297_v50 = vadd.f32 %v1247_v46, %v863_v27  ;;  %v1250_v34 = vadd.f32 %v1642_v48, %v1578_v44 }
 0x1e5   : > { %v1579_v40 = vpop.f32.mrb[12].mxu0  ;;  %1313 = vst [vmem:[#allocation2 + $0x20] sm:$0xff] %v1297_v50  ;;  %v1298_v42 = vadd.f32 %v1250_v34, %v864_v49  ;;  %v1643_v47 = vpop.f32.mrb[12].mxu1 }
 0x1e6   : > { %v1580_v51 = vpop.f32.mrb[13].mxu0  ;;  %v1644_v57 = vpop.f32.mrb[13].mxu1 }
 0x1e7   : > { %v1581_v52 = vadd.f32 %v1580_v51, %v1579_v40  ;;  %v1582_v38 = vpop.f32.mrb[14].mxu0  ;;  %1314 = vst [vmem:[#allocation2 + $0x28] sm:$0xff] %v1298_v42  ;;  %v1645_v53 = vadd.f32 %v1644_v57, %v1643_v47  ;;  %v1646_v58 = vpop.f32.mrb[14].mxu1  ;;  %v871_v40 = vld [vmem:[#allocation2 + $0x60] sm:$0xff]  ;;  %v872_v57 = vld [vmem:[#allocation2 + $0x68] sm:$0xff] }
 0x1e8   : > { %v1583_v54 = vpop.f32.mrb[15].mxu0  ;;  %v1647_v39 = vpop.f32.mrb[15].mxu1 }
 0x1e9   : > { %v1584_v56 = vadd.f32 %v1583_v54, %v1582_v38  ;;  %v1255_v59 = vadd.f32 %v1645_v53, %v1581_v52  ;;  %v1648_v60 = vadd.f32 %v1647_v39, %v1646_v58 }
 0x1eb   : > { %v1299_v62 = vadd.f32 %v1255_v59, %v865_v55  ;;  %v1258_v1 = vadd.f32 %v1648_v60, %v1584_v56 }
 0x1ed   : > { %v1585_v2 = vpop.f32.mrb[16].mxu0  ;;  %1315 = vst [vmem:[#allocation2 + $0x30] sm:$0xff] %v1299_v62  ;;  %v1300_v3 = vadd.f32 %v1258_v1, %v866_v61  ;;  %v1649_v4 = vpop.f32.mrb[16].mxu1 }
 0x1ee   : > { %v1586_v63 = vpop.f32.mrb[17].mxu0  ;;  %v1650_v6 = vpop.f32.mrb[17].mxu1 }
 0x1ef   : > { %v1587_v5 = vadd.f32 %v1586_v63, %v1585_v2  ;;  %v1588_v7 = vpop.f32.mrb[18].mxu0  ;;  %1316 = vst [vmem:[#allocation2 + $0x38] sm:$0xff] %v1300_v3  ;;  %v1651_v8 = vadd.f32 %v1650_v6, %v1649_v4  ;;  %v1652_v0 = vpop.f32.mrb[18].mxu1  ;;  %v873_v2 = vld [vmem:[#allocation2 + $0x70] sm:$0xff]  ;;  %v874_v6 = vld [vmem:[#allocation2 + $0x78] sm:$0xff] }
 0x1f0   : > { %v1589_v9 = vpop.f32.mrb[19].mxu0  ;;  %v1653_v12 = vpop.f32.mrb[19].mxu1 }
 0x1f1   : > { %v1590_v11 = vadd.f32 %v1589_v9, %v1588_v7  ;;  %v1263_v13 = vadd.f32 %v1651_v8, %v1587_v5  ;;  %v1654_v14 = vadd.f32 %v1653_v12, %v1652_v0 }
 0x1f3   : > { %v1301_v16 = vadd.f32 %v1263_v13, %v867_v10  ;;  %v1266_v17 = vadd.f32 %v1654_v14, %v1590_v11 }
 0x1f5   : > { %v1591_v18 = vpop.f32.mrb[20].mxu0  ;;  %1317 = vst [vmem:[#allocation2 + $0x40] sm:$0xff] %v1301_v16  ;;  %v1302_v19 = vadd.f32 %v1266_v17, %v868_v15  ;;  %v1655_v20 = vpop.f32.mrb[20].mxu1 }
 0x1f6   : > { %v1592_v21 = vpop.f32.mrb[21].mxu0  ;;  %v1656_v23 = vpop.f32.mrb[21].mxu1 }
 0x1f7   : > { %v1593_v22 = vadd.f32 %v1592_v21, %v1591_v18  ;;  %v1594_v24 = vpop.f32.mrb[22].mxu0  ;;  %1318 = vst [vmem:[#allocation2 + $0x48] sm:$0xff] %v1302_v19  ;;  %v1657_v25 = vadd.f32 %v1656_v23, %v1655_v20  ;;  %v1658_v26 = vpop.f32.mrb[22].mxu1 }
 0x1f8   : > { %v1595_v28 = vpop.f32.mrb[23].mxu0  ;;  %v1659_v31 = vpop.f32.mrb[23].mxu1 }
 0x1f9   : > { %v1596_v30 = vadd.f32 %v1595_v28, %v1594_v24  ;;  %v1271_v32 = vadd.f32 %v1657_v25, %v1593_v22  ;;  %v1660_v33 = vadd.f32 %v1659_v31, %v1658_v26 }
 0x1fb   : > { %v1303_v36 = vadd.f32 %v1271_v32, %v869_v29  ;;  %v1274_v37 = vadd.f32 %v1660_v33, %v1596_v30 }
 0x1fd   : > { %v1597_v41 = vpop.f32.mrb[24].mxu0  ;;  %1319 = vst [vmem:[#allocation2 + $0x50] sm:$0xff] %v1303_v36  ;;  %v1304_v43 = vadd.f32 %v1274_v37, %v870_v35  ;;  %v1661_v27 = vpop.f32.mrb[24].mxu1 }
 0x1fe   : > { %v1598_v44 = vpop.f32.mrb[25].mxu0  ;;  %v1662_v46 = vpop.f32.mrb[25].mxu1 }
 0x1ff   : > { %v1599_v45 = vadd.f32 %v1598_v44, %v1597_v41  ;;  %v1600_v48 = vpop.f32.mrb[26].mxu0  ;;  %1320 = vst [vmem:[#allocation2 + $0x58] sm:$0xff] %v1304_v43  ;;  %v1663_v49 = vadd.f32 %v1662_v46, %v1661_v27  ;;  %v1664_v50 = vpop.f32.mrb[26].mxu1 }
 0x200   : > { %v1601_v34 = vpop.f32.mrb[27].mxu0  ;;  %v1665_v47 = vpop.f32.mrb[27].mxu1 }
 0x201   : > { %v1602_v42 = vadd.f32 %v1601_v34, %v1600_v48  ;;  %v1279_v51 = vadd.f32 %v1663_v49, %v1599_v45  ;;  %v1666_v52 = vadd.f32 %v1665_v47, %v1664_v50 }
 0x203   : > { %v1305_v38 = vadd.f32 %v1279_v51, %v871_v40  ;;  %v1282_v53 = vadd.f32 %v1666_v52, %v1602_v42 }
 0x205   : > { %v1603_v58 = vpop.f32.mrb[28].mxu0  ;;  %1321 = vst [vmem:[#allocation2 + $0x60] sm:$0xff] %v1305_v38  ;;  %v1306_v54 = vadd.f32 %v1282_v53, %v872_v57  ;;  %v1667_v55 = vpop.f32.mrb[28].mxu1 }
 0x206   : > { %v1604_v56 = vpop.f32.mrb[29].mxu0  ;;  %v1668_v59 = vpop.f32.mrb[29].mxu1 }
 0x207   : > { %v1605_v39 = vadd.f32 %v1604_v56, %v1603_v58  ;;  %v1606_v60 = vpop.f32.mrb[30].mxu0  ;;  %1322 = vst [vmem:[#allocation2 + $0x68] sm:$0xff] %v1306_v54  ;;  %v1669_v61 = vadd.f32 %v1668_v59, %v1667_v55  ;;  %v1670_v62 = vpop.f32.mrb[30].mxu1 }
 0x208   : > { %v1607_v1 = vpop.f32.mrb[31].mxu0  ;;  %v1671_v4 = vpop.f32.mrb[31].mxu1 }
 0x209   : > { %v1608_v3 = vadd.f32 %v1607_v1, %v1606_v60  ;;  %v1287_v63 = vadd.f32 %v1669_v61, %v1605_v39  ;;  %v1672_v5 = vadd.f32 %v1671_v4, %v1670_v62 }
 0x20b   : > { %v1307_v7 = vadd.f32 %v1287_v63, %v873_v2  ;;  %v1290_v8 = vadd.f32 %v1672_v5, %v1608_v3 }
 0x20d   : > { %1323 = vst [vmem:[#allocation2 + $0x70] sm:$0xff] %v1307_v7  ;;  %v1308_v0 = vadd.f32 %v1290_v8, %v874_v6 }
 0x20f   : > { %1324 = vst [vmem:[#allocation2 + $0x78] sm:$0xff] %v1308_v0 }
 0x210 PF: > { %p1540_p5 = scmp.ne.s32.totalorder %s1818_s28, 1 }
 0x211   : > { %v1329_v9 = vld [vmem:[#allocation2] sm:$0xff] (!%p1540_p5)  ;;  %s2319_s5 = sld [smem:[#allocation8_spill]] (!%p1540_p5)  ;;  %v1330_v11 = vld [vmem:[#allocation2 + $0x8] sm:$0xff] (!%p1540_p5)  ;;  %v1331_v14 = vld [vmem:[#allocation2 + $0x10] sm:$0xff] (!%p1540_p5) }
 0x212   : > { %1328 = sbr.rel (%p1540_p5) target bundleno = 546 (0x222), region = 75  ;;  %v1332_v15 = vld [vmem:[#allocation2 + $0x18] sm:$0xff] (!%p1540_p5)  ;;  %v1333_v16 = vld [vmem:[#allocation2 + $0x20] sm:$0xff] (!%p1540_p5)  ;;  %v1334_v20 = vld [vmem:[#allocation2 + $0x28] sm:$0xff] (!%p1540_p5) }
 0x213   : > { %v1335_v21 = vld [vmem:[#allocation2 + $0x30] sm:$0xff] (!%p1540_p5)  ;;  %v1336_v22 = vld [vmem:[#allocation2 + $0x38] sm:$0xff] (!%p1540_p5)  ;;  %v1337_v26 = vld [vmem:[#allocation2 + $0x40] sm:$0xff] (!%p1540_p5) }
 0x214   : > { %v1338_v28 = vld [vmem:[#allocation2 + $0x48] sm:$0xff] (!%p1540_p5)  ;;  %v1339_v29 = vld [vmem:[#allocation2 + $0x50] sm:$0xff] (!%p1540_p5)  ;;  %v1340_v33 = vld [vmem:[#allocation2 + $0x58] sm:$0xff] (!%p1540_p5) }
 0x215   : > { %v1341_v35 = vld [vmem:[#allocation2 + $0x60] sm:$0xff] (!%p1540_p5)  ;;  %v1342_v36 = vld [vmem:[#allocation2 + $0x68] sm:$0xff] (!%p1540_p5)  ;;  %v1343_v27 = vld [vmem:[#allocation2 + $0x70] sm:$0xff] (!%p1540_p5) }
 0x216   : > { %v1344_v44 = vld [vmem:[#allocation2 + $0x78] sm:$0xff] (!%p1540_p5) }
 0x217   : > { %v1541_v10 = vld [vmem:[%s2319_s5] ss:$0 sm:$0xff] (!%p1540_p5) }
 0x218   : > { %v1352_v12 = vadd.f32 (!%p1540_p5), %v1541_v10, %v1329_v9  ;;  %v1353_v13 = vadd.f32 (!%p1540_p5), %v1541_v10, %v1330_v11  ;;  %v1354_v17 = vadd.f32 (!%p1540_p5), %v1541_v10, %v1331_v14  ;;  %v1355_v18 = vadd.f32 (!%p1540_p5), %v1541_v10, %v1332_v15 }
 0x219   : > { %v1356_v19 = vadd.f32 %v1541_v10, %v1333_v16  ;;  %v1357_v23 = vadd.f32 %v1541_v10, %v1334_v20  ;;  %v1358_v24 = vadd.f32 %v1541_v10, %v1335_v21  ;;  %v1359_v25 = vadd.f32 %v1541_v10, %v1336_v22 }
 0x21a   : > { %1368 = vst [vmem:[%s2030_s22] sm:$0xff] %v1352_v12  ;;  %1369 = vst [vmem:[%s2030_s22 + $0x8] sm:$0xff] %v1353_v13  ;;  %v1360_v30 = vadd.f32 %v1541_v10, %v1337_v26  ;;  %v1361_v31 = vadd.f32 %v1541_v10, %v1338_v28  ;;  %v1362_v32 = vadd.f32 %v1541_v10, %v1339_v29 }
 0x21b   : > { %1370 = vst [vmem:[%s2030_s22 + $0x10] sm:$0xff] %v1354_v17  ;;  %1371 = vst [vmem:[%s2030_s22 + $0x18] sm:$0xff] %v1355_v18  ;;  %v1363_v37 = vadd.f32 %v1541_v10, %v1340_v33  ;;  %v1364_v41 = vadd.f32 %v1541_v10, %v1341_v35  ;;  %v1365_v43 = vadd.f32 %v1541_v10, %v1342_v36 }
 0x21c   : > { %1372 = vst [vmem:[%s2030_s22 + $0x20] sm:$0xff] %v1356_v19  ;;  %1373 = vst [vmem:[%s2030_s22 + $0x28] sm:$0xff] %v1357_v23  ;;  %v1366_v45 = vadd.f32 %v1541_v10, %v1343_v27  ;;  %v1367_v46 = vadd.f32 %v1541_v10, %v1344_v44 }
 0x21d   : > { %1374 = vst [vmem:[%s2030_s22 + $0x30] sm:$0xff] %v1358_v24  ;;  %1375 = vst [vmem:[%s2030_s22 + $0x38] sm:$0xff] %v1359_v25 }
 0x21e   : > { %1376 = vst [vmem:[%s2030_s22 + $0x40] sm:$0xff] %v1360_v30  ;;  %1377 = vst [vmem:[%s2030_s22 + $0x48] sm:$0xff] %v1361_v31 }
 0x21f   : > { %1378 = vst [vmem:[%s2030_s22 + $0x50] sm:$0xff] %v1362_v32  ;;  %1379 = vst [vmem:[%s2030_s22 + $0x58] sm:$0xff] %v1363_v37 }
 0x220   : > { %1380 = vst [vmem:[%s2030_s22 + $0x60] sm:$0xff] %v1364_v41  ;;  %1381 = vst [vmem:[%s2030_s22 + $0x68] sm:$0xff] %v1365_v43 }
 0x221   : > { %1382 = vst [vmem:[%s2030_s22 + $0x70] sm:$0xff] %v1366_v45  ;;  %1383 = vst [vmem:[%s2030_s22 + $0x78] sm:$0xff] %v1367_v46 }
 0x222 PF: > { %s22_s7 = sadd.s32 1, %s1834_s7   ;;  %s2320_s26 = smov %s1814_s27 }
 0x223   : > { %p19_p6 = scmp.ge.s32.totalorder %s22_s7, 18   ;;  %s2321_s27 = smov %s1938_s4 }
 0x224   : > { %s2322_s28 = smov %s1826_s29  ;;  %s2323_s0 = smov %s1830_s30 }
 0x225   : > { %s2324_s29 = smov %s2327_s8  ;;  %s2325_s30 = smov %s2331_s9 }
 0x226   :  { %21 = sbr.rel (!%p19_p6) target bundleno = 20 (0x14), region = 117 }

// kernel: gcn_forward.2
= control target key start
LH: loop header
LB: loop body
LE: loop exit
PB: predicated region body
PF: predicated region fallthrough
CT: control target
= control target key end

     0   :  { %s2782_s0 = inlined_call_operand.vmem [shape: s32[8,2], index: 0, kind: input, shape index: {}]   ;;  %s2783_s1 = inlined_call_operand.vmem [shape: bf16[1024,1024], index: 1, kind: input, shape index: {}]   ;;  %s2784_s2 = inlined_call_operand.vmem [shape: f32[1024,1], index: 2, kind: input, shape index: {}]   ;;  %s2785_s3 = inlined_call_operand.vmem [shape: f32[1,1024], index: 3, kind: input, shape index: {}]   ;;  %s2786_s4 = inlined_call_operand.vmem [shape: bf16[1024,128], index: 4, kind: input, shape index: {}]   ;;  %s2787_s5 = inlined_call_operand.vmem [shape: f32[1,128], index: 5, kind: input, shape index: {}]   ;;  %s2788_s6 = inlined_call_operand.vmem [shape: bf16[128,128], index: 6, kind: input, shape index: {}]   ;;  %s2789_s7 = inlined_call_operand.vmem [shape: bf16[1024,128], index: 7, kind: output, shape index: {}]  }
   0x1   :  { %2791 = sst [smem:[#allocation7_spill]] %s2786_s4  ;;  %s12_s26 = sshll.u32 %s2782_s0, 4  ;;  %s13_s26 = int_to_ptr.vmem [resolvable:$true] %s12_s26 }
   0x2   :  { %2792 = sst [smem:[#allocation8_spill]] %s2787_s5  ;;  %s2201_s27 = scalar_lea.vmem %s13_s26, 128 }
   0x3   :  { %2793 = sst [smem:[#allocation9_spill]] %s2788_s6  ;;  %p2202_p0 = scmp.ne.s32.totalorder %s13_s26, %s2201_s27 }
   0x4   :  { %p2206_p1 = scmp.lt.s32.totalorder %s13_s26, %s13_s26  ;;  %p2207_p2 = scmp.lt.s32.totalorder %s2201_s27, %s2201_s27 }
   0x6   :  { %p2208_p3 = por %p2207_p2, %p2206_p1 }
   0x8   :  { %p2209_p4 = pnand %p2208_p3, %p2202_p0 }
   0xa   :  { %2212 = shalt.err (!%p2209_p4)  }
   0xb   :  { %s2271_s28 = smov [#allocation4]  }
   0xc   :  { %15 = dma.vmem_to_smem %s13_s26, 128, %s2271_s28, [#allocation3] }
   0xd   :  { %2241 = dma.done.wait [#allocation3], 128 }
   0xe   :  { %2242 = vsyncadd [#allocation3], 4294967168 }
   0xf   :  { %17 = sfence }
  0x10   :  { %s2317_s29 = smov 0   ;;  %s2319_s30 = smov 0  }
  0x11   :  { %s2321_s8 = smov 0   ;;  %s2323_s0 = smov 0  }
  0x12   :  { %s2325_s9 = smov 0   ;;  %s2327_s10 = smov 0  }
  0x13   :  { %s2329_s11 = smov 0  }
  0x14 LB: > { %s32_s12 = sadd.s32 1, %s2261_s9  ;;  %s35_s13 = sadd.s32 1, %s2265_s10  ;;  %s2269_s11 = sphi %s2329_s11, %s23_s11   ;;  %s2265_s10 = sphi %s2327_s10, %s2803_s10   ;;  %s2261_s9 = sphi %s2325_s9, %s2802_s9   ;;  %s2257_s0 = sphi %s2323_s0, %s2801_s0   ;;  %s2253_s8 = sphi %s2321_s8, %s2800_s8   ;;  %s2249_s30 = sphi %s2319_s30, %s2799_s30   ;;  %s2245_s29 = sphi %s2317_s29, %s2798_s29  }
  0x15   : > { %p33_p5 = scmp.ge.s32.totalorder %s32_s12, 2  ;;  %s39_s14 = sshra.s32 %s2261_s9, 7 }
  0x16   : > { %s41_s15 = sadd.s32 %s2265_s10, %s39_s14  ;;  %s44_s16 = sand.u32 127, %s2261_s9 }
  0x17   : > { %s2805_s12 = smov (%p33_p5, %s32_s12), 0  ;;  %s2807_s13 = smov (!%p33_p5, %s35_s13), %s2265_s10 }
  0x18   : > { %s1762_s17 = sshll.u32 %s41_s15, 7  ;;  %p37_p6 = scmp.ge.s32.totalorder %s2807_s13, 8 }
  0x19   : > { %s45_s18 = sadd.s32 %s1762_s17, %s44_s16  ;;  %s49_s20 = sshra.s32 %s2805_s12, 7 }
  0x1a   : > { %s46_s19 = sld [smem:[#allocation4 + %s45_s18]]  ;;  %s2809_s13 = smov (%p37_p6, %s2807_s13), 0 }
  0x1b   : > { %s54_s21 = sand.u32 127, %s2805_s12  ;;  %p71_p7 = scmp.ne.s32.totalorder %s2249_s30, %s2245_s29 }
  0x1c   : > { %s51_s22 = sadd.s32 %s49_s20, %s2809_s13  ;;  %p72_p8 = scmp.eq.s32.totalorder %s2269_s11, 0 }
  0x1d   : > { %s1763_s23 = sshll.u32 %s51_s22, 7  ;;  %s64_s6 = sadd.s32 1, %s2249_s30 }
  0x1e   : > { %s55_s24 = sadd.s32 %s1763_s23, %s54_s21  ;;  %p2368_p9 = por %p72_p8, %p71_p7 }
  0x1f   : > { %s56_s26 = sld [smem:[#allocation4 + %s55_s24]]  ;;  %p1765_p11 = scmp.ge.s32.totalorder %s2269_s11, 16 }
  0x20   : > { %s47_s27 = smul.u32 %s2265_s10, %s46_s19 }
  0x21   : > { %s48_s28 = smul.u32 %s2261_s9, %s46_s19 }
  0x25   : > { %s57_s14 = smul.u32 %s56_s26, %s2809_s13 }
  0x26   : > { %s58_s15 = smul.u32 %s56_s26, %s2805_s12 }
  0x27   : > { %s59_s16 = ssub.s32 %s47_s27, %s57_s14  ;;  %247 = sbr.rel (%p1765_p11) target bundleno = 76 (0x4c), region = 28 }
  0x28   : > { %s60_s17 = ssub.s32 %s48_s28, %s58_s15 }
  0x29   : > { %s61_s5 = sor.u32 %s60_s17, %s59_s16 }
  0x2a   : > { %p62_p10 = scmp.eq.s32.totalorder %s61_s5, 0 }
  0x2c   : > { %s2378_s4 = scalar_select %p62_p10, %s2249_s30, %s64_s6  }
  0x2e   : > { %250 = sbr.rel (!%p2368_p9) target bundleno = 76 (0x4c), region = 32  ;;  %s262_s20 = sld [smem:[#allocation4 + %s45_s18]] (%p2368_p9) }
  0x2f   : > { %s252_s19 = sand.u32 (%p2368_p9), 1, %s2249_s30  }
  0x30   : > { %s1766_s23 = sshll.u32 (%p2368_p9), %s252_s19, 8 }
  0x31   : > { %s2394_s18 = scalar_lea.vmem (%p2368_p9), [#allocation5], %s1766_s23 }
  0x34   : > { %s263_s21 = smul.u32 (%p2368_p9), %s2265_s10, %s262_s20 }
  0x35   : > { %s264_s22 = smul.u32 %s2261_s9, %s262_s20 }
  0x36   : > { %s1844_s24 = sshll.u32 %s263_s21, 7 }
  0x37   : > { %s1769_s26 = sshll.u32 %s264_s22, 2 }
  0x38   : > { %s268_s27 = sadd.s32 %s1844_s24, %s1769_s26 }
  0x39   : > { %s1771_s5 = sshll.u32 %s268_s27, 2 }
  0x3a   : > { %s2389_s14 = scalar_lea.vmem %s2783_s1, %s1771_s5 }
  0x3b   : > { %v283_v0 = vld [vmem:[%s2389_s14] sm:$0xff]  ;;  %v285_v1 = vld [vmem:[%s2389_s14 + $0x8] sm:$0xff] }
  0x3c   : > { %v287_v2 = vld [vmem:[%s2389_s14 + $0x20] sm:$0xff]  ;;  %284 = vst [vmem:[%s2394_s18] sm:$0xff] %v283_v0  ;;  %286 = vst [vmem:[%s2394_s18 + $0x8] sm:$0xff] %v285_v1  ;;  %v289_v3 = vld [vmem:[%s2389_s14 + $0x28] sm:$0xff] }
  0x3d   : > { %288 = vst [vmem:[%s2394_s18 + $0x10] sm:$0xff] %v287_v2  ;;  %v291_v4 = vld [vmem:[%s2389_s14 + $0x40] sm:$0xff]  ;;  %v293_v5 = vld [vmem:[%s2389_s14 + $0x48] sm:$0xff]  ;;  %290 = vst [vmem:[%s2394_s18 + $0x18] sm:$0xff] %v289_v3 }
  0x3e   : > { %292 = vst [vmem:[%s2394_s18 + $0x20] sm:$0xff] %v291_v4  ;;  %294 = vst [vmem:[%s2394_s18 + $0x28] sm:$0xff] %v293_v5  ;;  %v295_v6 = vld [vmem:[%s2389_s14 + $0x60] sm:$0xff]  ;;  %v297_v7 = vld [vmem:[%s2389_s14 + $0x68] sm:$0xff] }
  0x3f   : > { %v299_v8 = vld [vmem:[%s2389_s14 + $0x80] sm:$0xff]  ;;  %296 = vst [vmem:[%s2394_s18 + $0x30] sm:$0xff] %v295_v6  ;;  %298 = vst [vmem:[%s2394_s18 + $0x38] sm:$0xff] %v297_v7  ;;  %v301_v9 = vld [vmem:[%s2389_s14 + $0x88] sm:$0xff] }
  0x40   : > { %300 = vst [vmem:[%s2394_s18 + $0x40] sm:$0xff] %v299_v8  ;;  %v303_v10 = vld [vmem:[%s2389_s14 + $0xa0] sm:$0xff]  ;;  %v305_v11 = vld [vmem:[%s2389_s14 + $0xa8] sm:$0xff]  ;;  %302 = vst [vmem:[%s2394_s18 + $0x48] sm:$0xff] %v301_v9 }
  0x41   : > { %304 = vst [vmem:[%s2394_s18 + $0x50] sm:$0xff] %v303_v10  ;;  %306 = vst [vmem:[%s2394_s18 + $0x58] sm:$0xff] %v305_v11  ;;  %v307_v12 = vld [vmem:[%s2389_s14 + $0xc0] sm:$0xff]  ;;  %v309_v13 = vld [vmem:[%s2389_s14 + $0xc8] sm:$0xff] }
  0x42   : > { %v311_v14 = vld [vmem:[%s2389_s14 + $0xe0] sm:$0xff]  ;;  %308 = vst [vmem:[%s2394_s18 + $0x60] sm:$0xff] %v307_v12  ;;  %310 = vst [vmem:[%s2394_s18 + $0x68] sm:$0xff] %v309_v13  ;;  %v313_v15 = vld [vmem:[%s2389_s14 + $0xe8] sm:$0xff] }
  0x43   : > { %312 = vst [vmem:[%s2394_s18 + $0x70] sm:$0xff] %v311_v14  ;;  %v315_v16 = vld [vmem:[%s2389_s14 + $0x100] sm:$0xff]  ;;  %v317_v17 = vld [vmem:[%s2389_s14 + $0x108] sm:$0xff]  ;;  %314 = vst [vmem:[%s2394_s18 + $0x78] sm:$0xff] %v313_v15 }
  0x44   : > { %316 = vst [vmem:[%s2394_s18 + $0x80] sm:$0xff] %v315_v16  ;;  %318 = vst [vmem:[%s2394_s18 + $0x88] sm:$0xff] %v317_v17  ;;  %v319_v18 = vld [vmem:[%s2389_s14 + $0x120] sm:$0xff]  ;;  %v321_v19 = vld [vmem:[%s2389_s14 + $0x128] sm:$0xff] }
  0x45   : > { %v323_v20 = vld [vmem:[%s2389_s14 + $0x140] sm:$0xff]  ;;  %320 = vst [vmem:[%s2394_s18 + $0x90] sm:$0xff] %v319_v18  ;;  %322 = vst [vmem:[%s2394_s18 + $0x98] sm:$0xff] %v321_v19  ;;  %v325_v21 = vld [vmem:[%s2389_s14 + $0x148] sm:$0xff] }
  0x46   : > { %324 = vst [vmem:[%s2394_s18 + $0xa0] sm:$0xff] %v323_v20  ;;  %v327_v22 = vld [vmem:[%s2389_s14 + $0x160] sm:$0xff]  ;;  %v329_v23 = vld [vmem:[%s2389_s14 + $0x168] sm:$0xff]  ;;  %326 = vst [vmem:[%s2394_s18 + $0xa8] sm:$0xff] %v325_v21 }
  0x47   : > { %328 = vst [vmem:[%s2394_s18 + $0xb0] sm:$0xff] %v327_v22  ;;  %330 = vst [vmem:[%s2394_s18 + $0xb8] sm:$0xff] %v329_v23  ;;  %v331_v24 = vld [vmem:[%s2389_s14 + $0x180] sm:$0xff]  ;;  %v333_v25 = vld [vmem:[%s2389_s14 + $0x188] sm:$0xff] }
  0x48   : > { %v335_v26 = vld [vmem:[%s2389_s14 + $0x1a0] sm:$0xff]  ;;  %332 = vst [vmem:[%s2394_s18 + $0xc0] sm:$0xff] %v331_v24  ;;  %334 = vst [vmem:[%s2394_s18 + $0xc8] sm:$0xff] %v333_v25  ;;  %v337_v27 = vld [vmem:[%s2389_s14 + $0x1a8] sm:$0xff] }
  0x49   : > { %336 = vst [vmem:[%s2394_s18 + $0xd0] sm:$0xff] %v335_v26  ;;  %v339_v28 = vld [vmem:[%s2389_s14 + $0x1c0] sm:$0xff]  ;;  %v341_v29 = vld [vmem:[%s2389_s14 + $0x1c8] sm:$0xff]  ;;  %338 = vst [vmem:[%s2394_s18 + $0xd8] sm:$0xff] %v337_v27 }
  0x4a   : > { %340 = vst [vmem:[%s2394_s18 + $0xe0] sm:$0xff] %v339_v28  ;;  %342 = vst [vmem:[%s2394_s18 + $0xe8] sm:$0xff] %v341_v29  ;;  %v343_v30 = vld [vmem:[%s2389_s14 + $0x1e0] sm:$0xff]  ;;  %v345_v31 = vld [vmem:[%s2389_s14 + $0x1e8] sm:$0xff] }
  0x4b   : > { %344 = vst [vmem:[%s2394_s18 + $0xf0] sm:$0xff] %v343_v30  ;;  %346 = vst [vmem:[%s2394_s18 + $0xf8] sm:$0xff] %v345_v31 }
  0x4c PF: > { %p1772_p12 = scmp.ge.s32.totalorder %s2269_s11, 1  ;;  %p368_p13 = scmp.lt.s32.totalorder %s2269_s11, 17 }
  0x4e   : > { %p369_p0 = pnand %p1772_p12, %p368_p13 }
  0x4f   : > { %s375_s25 = sand.u32 (!%p369_p0), 1, %s2245_s29   ;;  %s1774_s15 = sshll.u32 (!%p369_p0), %s2257_s0, 4 }
  0x50   : > { %372 = sbr.rel (%p369_p0) target bundleno = 794 (0x31a), region = 63  ;;  %s1773_s16 = sshll.u32 (!%p369_p0), %s375_s25, 8 }
  0x51   : > { %p426_p1 = scmp.lt.s32.totalorder (!%p369_p0), %s1774_s15, 127  ;;  %s1776_s17 = sshll.u32 (!%p369_p0), %s2253_s8, 2 }
  0x52   : > { %p432_p2 = scmp.lt.s32.totalorder (!%p369_p0), %s1776_s17, 7  ;;  %s2478_s28 = scalar_lea.vmem (!%p369_p0), [#allocation5], %s1773_s16 }
  0x53   : > { %p1779_p3 = scmp.ne.s32.totalorder (!%p369_p0), %s2253_s8, 0 }
  0x57   : > { %s2811_s15 = smov (!%p426_p1, %s1774_s15), 127  ;;  %s2813_s17 = smov (!%p432_p2, %s1776_s17), 7 }
  0x58   : > { %s1775_s20 = sshll.u32 %s2811_s15, 3  ;;  %s1778_s19 = sshll.u32 %s2811_s15, 2  ;;  %v2272_v32 = vmov (!%p1779_p3), 0.0  }
  0x59   : > { %s2465_s23 = scalar_lea.vmem %s2784_s2, %s1775_s20  ;;  %s2470_s27 = scalar_lea.vmem %s2789_s7, %s1778_s19  ;;  %447 = vst [vmem:[#allocation2] sm:$0xff] (!%p1779_p3), %v2272_v32  ;;  %448 = vst [vmem:[#allocation2 + $0x8] sm:$0xff] (!%p1779_p3), %v2272_v32 }
  0x5a   : > { %s434_s6 = scalar_lea.vmem %s2785_s3, %s2813_s17  ;;  %446 = sbr.rel (%p1779_p3) target bundleno = 97 (0x61), region = 71  ;;  %449 = vst [vmem:[#allocation2 + $0x10] sm:$0xff] (!%p1779_p3), %v2272_v32  ;;  %450 = vst [vmem:[#allocation2 + $0x18] sm:$0xff] (!%p1779_p3), %v2272_v32 }
  0x5b   : > { %451 = vst [vmem:[#allocation2 + $0x20] sm:$0xff] (!%p1779_p3), %v2272_v32  ;;  %452 = vst [vmem:[#allocation2 + $0x28] sm:$0xff] (!%p1779_p3), %v2272_v32 }
  0x5c   : > { %453 = vst [vmem:[#allocation2 + $0x30] sm:$0xff] (!%p1779_p3), %v2272_v32  ;;  %454 = vst [vmem:[#allocation2 + $0x38] sm:$0xff] (!%p1779_p3), %v2272_v32 }
  0x5d   : > { %455 = vst [vmem:[#allocation2 + $0x40] sm:$0xff] (!%p1779_p3), %v2272_v32  ;;  %456 = vst [vmem:[#allocation2 + $0x48] sm:$0xff] (!%p1779_p3), %v2272_v32 }
  0x5e   : > { %457 = vst [vmem:[#allocation2 + $0x50] sm:$0xff] (!%p1779_p3), %v2272_v32  ;;  %458 = vst [vmem:[#allocation2 + $0x58] sm:$0xff] (!%p1779_p3), %v2272_v32 }
  0x5f   : > { %459 = vst [vmem:[#allocation2 + $0x60] sm:$0xff] (!%p1779_p3), %v2272_v32  ;;  %460 = vst [vmem:[#allocation2 + $0x68] sm:$0xff] (!%p1779_p3), %v2272_v32 }
  0x60   : > { %461 = vst [vmem:[#allocation2 + $0x70] sm:$0xff] (!%p1779_p3), %v2272_v32  ;;  %462 = vst [vmem:[#allocation2 + $0x78] sm:$0xff] (!%p1779_p3), %v2272_v32 }
  0x61 PF: > { %s463_s14 = sshra.s32 %s2253_s8, 7  ;;  %s468_s18 = sand.u32 127, %s2253_s8 }
  0x62   : > { %s465_s25 = sadd.s32 %s2257_s0, %s463_s14 }
  0x63   : > { %s1780_s15 = sshll.u32 %s465_s25, 7 }
  0x64   : > { %s469_s16 = sadd.s32 %s1780_s15, %s468_s18 }
  0x65   : > { %s470_s20 = sld [smem:[#allocation4 + %s469_s16]] }
  0x6b   : > { %p1781_p4 = scmp.eq.s32.totalorder %s470_s20, 0 }
  0x6c   : > { %v573_v33 = vld [vmem:[%s2465_s23 + $0x10] sm:$0xff] (!%p1781_p4)  ;;  %v571_v34 = vld [vmem:[%s2465_s23] sm:$0xff] (!%p1781_p4)  ;;  %s1782_s19 = sshll.u32 (!%p1781_p4), %s2253_s8, 9  ;;  %v2273_v35 = vmov (!%p1781_p4), 0   ;;  %v574_v36 = vld [vmem:[%s2465_s23 + $0x18] sm:$0xff] (!%p1781_p4)  ;;  %s2795_s26 = sld [smem:[#allocation7_spill]] (!%p1781_p4)  ;;  %v733_v18 = vlaneseq (!%p1781_p4) }
  0x6d   : > { %474 = sbr.rel (%p1781_p4) target bundleno = 528 (0x210), region = 75  ;;  %2160 = vset.pattern.permute.xlu1 (!%p1781_p4), %v2273_v35  ;;  %2159 = vset.pattern.permute.xlu0 (!%p1781_p4), %v2273_v35  ;;  %s818_s0 = sshra.s32 (!%p1781_p4), %s1782_s19, 3  ;;  %v572_v37 = vld [vmem:[%s2465_s23 + $0x8] sm:$0xff] (!%p1781_p4)  ;;  %v575_v39 = vld [vmem:[%s2465_s23 + $0x20] sm:$0xff] (!%p1781_p4)  ;;  %v578_v43 = vld [vmem:[%s2465_s23 + $0x38] sm:$0xff] (!%p1781_p4) }
  0x6e   : > { %599 = vperm.xlu1 (!%p1781_p4), %2160, %v573_v33   ;;  %589 = vperm.xlu0 (!%p1781_p4), %2159, %v571_v34   ;;  %s1783_s21 = sshll.u32 (!%p1781_p4), %s818_s0, 2  ;;  %v576_v38 = vld [vmem:[%s2465_s23 + $0x28] sm:$0xff] (!%p1781_p4)  ;;  %v577_v44 = vld [vmem:[%s2465_s23 + $0x30] sm:$0xff] (!%p1781_p4)  ;;  %v579_v50 = vld [vmem:[%s2465_s23 + $0x40] sm:$0xff] (!%p1781_p4)  ;;  %v734_v19 = vshrl.u32 (!%p1781_p4), %v733_v18, 7 }
  0x6f   : > { %v580_v49 = vld [vmem:[%s2465_s23 + $0x48] sm:$0xff] (!%p1781_p4)  ;;  %v582_v55 = vld [vmem:[%s2465_s23 + $0x58] sm:$0xff] (!%p1781_p4)  ;;  %v581_v56 = vld [vmem:[%s2465_s23 + $0x50] sm:$0xff] (!%p1781_p4) }
  0x70   : > { %v584_v61 = vld [vmem:[%s2465_s23 + $0x68] sm:$0xff] (!%p1781_p4)  ;;  %v583_v62 = vld [vmem:[%s2465_s23 + $0x60] sm:$0xff] (!%p1781_p4)  ;;  %v586_v5 = vld [vmem:[%s2465_s23 + $0x78] sm:$0xff] (!%p1781_p4)  ;;  %v739_v25 = vsub.s32 (!%p1781_p4), 1, %v734_v19  ;;  %v747_v26 = vsub.s32 (!%p1781_p4), 3, %v734_v19  ;;  %v735_v32 = vsub.s32 (!%p1781_p4), 0, %v734_v19 }
  0x71   : > { %v585_v6 = vld [vmem:[%s2465_s23 + $0x70] sm:$0xff] (!%p1781_p4)  ;;  %v2539_v20 = vld [vmem:[%s2478_s28 + $0x20] sm:$0xff] (!%p1781_p4)  ;;  %v2542_v21 = vld [vmem:[%s2478_s28 + $0x28] sm:$0xff] (!%p1781_p4)  ;;  %v743_v33 = vsub.s32 (!%p1781_p4), 2, %v734_v19 }
  0x72   : > { %s2492_s29 = scalar_lea.vmem (!%p1781_p4), %s2795_s26, %s1783_s21  ;;  %604 = vperm.xlu1 (!%p1781_p4), %2160, %v574_v36   ;;  %594 = vperm.xlu0 (!%p1781_p4), %2159, %v572_v37   ;;  %v475_v22 = vld [vmem:[%s2478_s28] sm:$0xff] (!%p1781_p4)  ;;  %v476_v23 = vld [vmem:[%s2478_s28 + $0x8] sm:$0xff] (!%p1781_p4)  ;;  %v2547_v24 = vld [vmem:[%s2478_s28 + $0x30] sm:$0xff] (!%p1781_p4)  ;;  %v515_v27 = vunpack.c.l.bf16 (!%p1781_p4), %v2539_v20  ;;  %v516_v28 = vunpack.c.h.bf16 (!%p1781_p4), %v2539_v20  ;;  %v517_v34 = vunpack.c.l.bf16 (!%p1781_p4), %v2542_v21  ;;  %v518_v35 = vunpack.c.h.bf16 (!%p1781_p4), %v2542_v21 }
  0x73   : > { %v2161_v40 = vld [vmem:[%s2492_s29 + $0x40] sm:$0xff] (!%p1781_p4)   ;;  %v2165_v46 = vld [vmem:[%s2492_s29 + $0x48] sm:$0xff] (!%p1781_p4)   ;;  %v2169_v52 = vld [vmem:[%s2492_s29 + $0x50] sm:$0xff] (!%p1781_p4)   ;;  %v507_v36 = vunpack.c.l.bf16 (!%p1781_p4), %v475_v22  ;;  %v509_v37 = vunpack.c.l.bf16 (!%p1781_p4), %v476_v23 }
  0x74   : > { %v2162_v41 = vld [vmem:[%s2492_s29 + $0xc0] sm:$0xff]   ;;  %1908 = vmatprep.subr.bf16.mxu0 %v2161_v40  ;;  %v2166_v47 = vld [vmem:[%s2492_s29 + $0xc8] sm:$0xff]   ;;  %v2170_v53 = vld [vmem:[%s2492_s29 + $0xd0] sm:$0xff]  }
  0x75   : > { %v2163_v42 = vld [vmem:[%s2492_s29] sm:$0xff]   ;;  %1972 = vmatprep.subr.bf16.mxu1 %v2162_v41  ;;  %v2167_v48 = vld [vmem:[%s2492_s29 + $0x8] sm:$0xff]   ;;  %v2171_v54 = vld [vmem:[%s2492_s29 + $0x10] sm:$0xff]  }
  0x76   : > { %v2164_v45 = vld [vmem:[%s2492_s29 + $0x80] sm:$0xff]   ;;  %614 = vperm.xlu1 %2160, %v576_v38   ;;  %609 = vperm.xlu0 %2159, %v575_v39   ;;  %v2168_v51 = vld [vmem:[%s2492_s29 + $0x88] sm:$0xff]   ;;  %v2172_v57 = vld [vmem:[%s2492_s29 + $0x90] sm:$0xff]  }
  0x77   : > { %1909 = vmatpush3.bf16.msra.mxu0 %v2163_v42  ;;  %1973 = vmatpush3.bf16.msra.mxu1 %v2164_v45  ;;  %v2173_v58 = vld [vmem:[%s2492_s29 + $0x58] sm:$0xff]   ;;  %v2177_v0 = vld [vmem:[%s2492_s29 + $0x60] sm:$0xff]   ;;  %v2181_v4 = vld [vmem:[%s2492_s29 + $0x68] sm:$0xff]   ;;  %v519_v42 = vunpack.c.l.bf16 %v2547_v24 }
  0x78   : > { %1910 = vmatprep.subr.bf16.mxu0 %v2165_v46  ;;  %1974 = vmatprep.subr.bf16.mxu1 %v2166_v47  ;;  %v2174_v59 = vld [vmem:[%s2492_s29 + $0xd8] sm:$0xff]   ;;  %v2178_v1 = vld [vmem:[%s2492_s29 + $0xe0] sm:$0xff]   ;;  %v2182_v7 = vld [vmem:[%s2492_s29 + $0xe8] sm:$0xff]   ;;  %v510_v46 = vunpack.c.h.bf16 %v476_v23 }
  0x79   : > { %v2175_v60 = vld [vmem:[%s2492_s29 + $0x18] sm:$0xff]   ;;  %v2179_v2 = vld [vmem:[%s2492_s29 + $0x20] sm:$0xff]   ;;  %v2183_v8 = vld [vmem:[%s2492_s29 + $0x28] sm:$0xff]  }
  0x7a   : > { %624 = vperm.xlu1 %2160, %v578_v43   ;;  %619 = vperm.xlu0 %2159, %v577_v44   ;;  %v2176_v63 = vld [vmem:[%s2492_s29 + $0x98] sm:$0xff]   ;;  %v2180_v3 = vld [vmem:[%s2492_s29 + $0xa0] sm:$0xff]   ;;  %v2184_v9 = vld [vmem:[%s2492_s29 + $0xa8] sm:$0xff]   ;;  %v520_v43 = vunpack.c.h.bf16 %v2547_v24  ;;  %v508_v44 = vunpack.c.h.bf16 %v475_v22 }
  0x7b   : > { %1911 = vmatpush3.bf16.msra.mxu0 %v2167_v48  ;;  %1975 = vmatpush3.bf16.msra.mxu1 %v2168_v51  ;;  %v2185_v10 = vld [vmem:[%s2492_s29 + $0x70] sm:$0xff]   ;;  %v2189_v14 = vld [vmem:[%s2492_s29 + $0x78] sm:$0xff]   ;;  %v2562_v39 = vld [vmem:[%s2478_s28 + $0x40] sm:$0xff] }
  0x7c   : > { %1912 = vmatprep.subr.bf16.mxu0 %v2169_v52  ;;  %1976 = vmatprep.subr.bf16.mxu1 %v2170_v53  ;;  %v2186_v11 = vld [vmem:[%s2492_s29 + $0xf0] sm:$0xff]   ;;  %v2190_v15 = vld [vmem:[%s2492_s29 + $0xf8] sm:$0xff]   ;;  %v731_v45 = vld [vmem:[%s434_s6] sm:$0xf]  ;;  %v524_v52 = vunpack.c.h.bf16 %v2562_v39 }
  0x7d   : > { %v2187_v12 = vld [vmem:[%s2492_s29 + $0x30] sm:$0xff]   ;;  %v2191_v16 = vld [vmem:[%s2492_s29 + $0x38] sm:$0xff]  }
  0x7e   : > { %634 = vperm.xlu1 %2160, %v580_v49   ;;  %629 = vperm.xlu0 %2159, %v579_v50   ;;  %v2188_v13 = vld [vmem:[%s2492_s29 + $0xb0] sm:$0xff]   ;;  %v2192_v17 = vld [vmem:[%s2492_s29 + $0xb8] sm:$0xff]  }
  0x7f   : > { %1913 = vmatpush3.bf16.msra.mxu0 %v2171_v54  ;;  %1977 = vmatpush3.bf16.msra.mxu1 %v2172_v57  ;;  %v2552_v29 = vld [vmem:[%s2478_s28 + $0x38] sm:$0xff]  ;;  %v477_v30 = vld [vmem:[%s2478_s28 + $0x10] sm:$0xff]  ;;  %v2575_v57 = vrot.slane %v731_v45, %v739_v25 }
  0x80   : > { %1914 = vmatprep.subr.bf16.mxu0 %v2173_v58  ;;  %1978 = vmatprep.subr.bf16.mxu1 %v2174_v59  ;;  %v478_v31 = vld [vmem:[%s2478_s28 + $0x18] sm:$0xff]  ;;  %v2559_v38 = vld [vmem:[%s2478_s28 + $0x50] sm:$0xff]  ;;  %v521_v47 = vunpack.c.l.bf16 %v2552_v29  ;;  %v522_v48 = vunpack.c.h.bf16 %v2552_v29  ;;  %v511_v49 = vunpack.c.l.bf16 %v477_v30  ;;  %v512_v53 = vunpack.c.h.bf16 %v477_v30 }
  0x81   : > { %v513_v50 = vunpack.c.l.bf16 %v478_v31  ;;  %v528_v51 = vunpack.c.h.bf16 %v2559_v38  ;;  %v514_v54 = vunpack.c.h.bf16 %v478_v31  ;;  %v2577_v58 = vrot.slane %v731_v45, %v747_v26 }
  0x82   : > { %644 = vperm.xlu1 %2160, %v582_v55   ;;  %639 = vperm.xlu0 %2159, %v581_v56  }
  0x83   : > { %1915 = vmatpush3.bf16.msra.mxu0 %v2175_v60  ;;  %1979 = vmatpush3.bf16.msra.mxu1 %v2176_v63  ;;  %v2579_v63 = vrot.slane %v731_v45, %v735_v32 }
  0x84   : > { %1916 = vmatprep.subr.bf16.mxu0 %v2177_v0  ;;  %1980 = vmatprep.subr.bf16.mxu1 %v2178_v1  ;;  %v2581_v0 = vrot.slane %v731_v45, %v743_v33 }
  0x86   : > { %654 = vperm.xlu1 %2160, %v584_v61   ;;  %649 = vperm.xlu0 %2159, %v583_v62  }
  0x87   : > { %1917 = vmatpush3.bf16.msra.mxu0 %v2179_v2  ;;  %1981 = vmatpush3.bf16.msra.mxu1 %v2180_v3 }
  0x88   : > { %1918 = vmatprep.subr.bf16.mxu0 %v2181_v4  ;;  %1982 = vmatprep.subr.bf16.mxu1 %v2182_v7 }
  0x8a   : > { %664 = vperm.xlu1 %2160, %v586_v5   ;;  %659 = vperm.xlu0 %2159, %v585_v6  }
  0x8b   : > { %1919 = vmatpush3.bf16.msra.mxu0 %v2183_v8  ;;  %1983 = vmatpush3.bf16.msra.mxu1 %v2184_v9  ;;  %v2584_v9 = vld [vmem:[%s2478_s28 + $0x58] sm:$0xff] }
  0x8c   : > { %1920 = vmatprep.subr.bf16.mxu0 %v2185_v10  ;;  %1984 = vmatprep.subr.bf16.mxu1 %v2186_v11  ;;  %v2587_v10 = vld [vmem:[%s2478_s28 + $0x48] sm:$0xff]  ;;  %v530_v25 = vunpack.c.h.bf16 %v2584_v9 }
  0x8f   : > { %1921 = vmatpush3.bf16.msra.mxu0 %v2187_v12  ;;  %1985 = vmatpush3.bf16.msra.mxu1 %v2188_v13 }
  0x90   : > { %1922 = vmatprep.subr.bf16.mxu0 %v2189_v14  ;;  %1986 = vmatprep.subr.bf16.mxu1 %v2190_v15 }
  0x93   : > { %1923 = vmatpush3.bf16.msra.mxu0 %v2191_v16  ;;  %1987 = vmatpush3.bf16.msra.mxu1 %v2192_v17 }
  0xed   : > { %v600_v40 = vpop.permute.xlu1 %599  ;;  %v590_v41 = vpop.permute.xlu0 %589 }
  0xee   : > { %v676_v55 = vmul.f32 %v600_v40, %v516_v28  ;;  %v678_v56 = vmul.f32 %v600_v40, %v518_v35  ;;  %v667_v59 = vmul.f32 %v590_v41, %v507_v36  ;;  %v669_v60 = vmul.f32 %v590_v41, %v509_v37 }
  0xef   : > { %v668_v3 = vmul.f32 %v590_v41, %v508_v44  ;;  %v670_v4 = vmul.f32 %v590_v41, %v510_v46  ;;  %v675_v23 = vmul.f32 %v600_v40, %v515_v27  ;;  %v526_v28 = vunpack.c.h.bf16 %v2587_v10 }
  0xf0   : > { %v762_v11 = vmul.f32 %v2575_v57, %v676_v55  ;;  %v764_v13 = vmul.f32 %v2577_v58, %v678_v56  ;;  %v753_v21 = vmul.f32 %v2579_v63, %v667_v59  ;;  %v755_v22 = vmul.f32 %v2581_v0, %v669_v60 }
  0xf1   : > { %v605_v61 = vpop.permute.xlu1 %604  ;;  %v595_v62 = vpop.permute.xlu0 %594  ;;  %v754_v19 = vmul.f32 %v2575_v57, %v668_v3  ;;  %v756_v20 = vmul.f32 %v2577_v58, %v670_v4  ;;  %v677_v33 = vmul.f32 %v600_v40, %v517_v34  ;;  %v527_v46 = vunpack.c.l.bf16 %v2559_v38 }
  0xf2   : > { %v680_v1 = vmul.f32 %v605_v61, %v520_v43  ;;  %v682_v2 = vmul.f32 %v605_v61, %v522_v48  ;;  %v671_v5 = vmul.f32 %v595_v62, %v511_v49  ;;  %v673_v6 = vmul.f32 %v595_v62, %v513_v50  ;;  %v489_v49 = vld [vmem:[%s2478_s28 + $0x70] sm:$0xff]  ;;  %v2607_v50 = vld [vmem:[%s2478_s28 + $0x60] sm:$0xff] }
  0xf3   : > { %v672_v7 = vmul.f32 %v595_v62, %v512_v53  ;;  %v674_v8 = vmul.f32 %v595_v62, %v514_v54  ;;  %v679_v35 = vmul.f32 %v605_v61, %v519_v42  ;;  %v681_v41 = vmul.f32 %v605_v61, %v521_v47  ;;  %v490_v42 = vld [vmem:[%s2478_s28 + $0x78] sm:$0xff]  ;;  %v488_v47 = vld [vmem:[%s2478_s28 + $0x68] sm:$0xff] }
  0xf4   : > { %v766_v12 = vmul.f32 %v2575_v57, %v680_v1  ;;  %v768_v14 = vmul.f32 %v2577_v58, %v682_v2  ;;  %v757_v17 = vmul.f32 %v2579_v63, %v671_v5  ;;  %v759_v18 = vmul.f32 %v2581_v0, %v673_v6 }
  0xf5   : > { %v758_v15 = vmul.f32 %v2575_v57, %v672_v7  ;;  %v760_v16 = vmul.f32 %v2577_v58, %v674_v8  ;;  %v615_v24 = vpop.permute.xlu1 %614  ;;  %v610_v26 = vpop.permute.xlu0 %609  ;;  %v529_v48 = vunpack.c.l.bf16 %v2584_v9  ;;  %v523_v34 = vunpack.c.l.bf16 %v2562_v39 }
  0xf6   : > { %v902_v31 = vpack.c.bf16 %v757_v17, %v753_v21  ;;  %v904_v32 = vpack.c.bf16 %v759_v18, %v755_v22  ;;  %v907_v36 = vpack.c.bf16 %v766_v12, %v762_v11  ;;  %v909_v37 = vpack.c.bf16 %v768_v14, %v764_v13  ;;  %v2623_v12 = vld [vmem:[%s2478_s28 + $0x90] sm:$0xff]  ;;  %v2626_v13 = vld [vmem:[%s2478_s28 + $0x80] sm:$0xff] }
  0xf7   : > { %v903_v29 = vpack.c.bf16 %v758_v15, %v754_v19  ;;  %v905_v30 = vpack.c.bf16 %v760_v16, %v756_v20  ;;  %v688_v43 = vmul.f32 %v615_v24, %v528_v51  ;;  %v684_v27 = vmul.f32 %v610_v26, %v524_v52  ;;  %v494_v19 = vld [vmem:[%s2478_s28 + $0x98] sm:$0xff]  ;;  %v492_v20 = vld [vmem:[%s2478_s28 + $0x88] sm:$0xff] }
  0xf8   : > { %v690_v44 = vmul.f32 %v615_v24, %v530_v25  ;;  %v686_v45 = vmul.f32 %v610_v26, %v526_v28  ;;  %v525_v40 = vunpack.c.l.bf16 %v2587_v10  ;;  %v761_v51 = vmul.f32 %v2579_v63, %v675_v23 }
  0xf9   : > { %1158 = vmatprep.mubr.bf16.mxu0 %v903_v29  ;;  %1255 = vmatprep.mubr.bf16.mxu1 %v905_v30  ;;  %v765_v52 = vmul.f32 %v2579_v63, %v679_v35  ;;  %v763_v38 = vmul.f32 %v2581_v0, %v677_v33  ;;  %v767_v53 = vmul.f32 %v2581_v0, %v681_v41  ;;  %v536_v56 = vunpack.c.h.bf16 %v489_v49  ;;  %v625_v61 = vpop.permute.xlu1 %624  ;;  %v620_v1 = vpop.permute.xlu0 %619 }
  0xfa   : > { %1159 = vmatmul.mubr.bf16.vlgmr.msra.gmra.mrb[0].mxu0 %v902_v31  ;;  %1256 = vmatmul.mubr.bf16.vlgmr.msra.gmra.mrb[0].mxu1 %v904_v32  ;;  %v770_v54 = vmul.f32 %v2575_v57, %v684_v27  ;;  %v774_v55 = vmul.f32 %v2575_v57, %v688_v43  ;;  %v532_v39 = vunpack.c.h.bf16 %v2607_v50  ;;  %v772_v59 = vmul.f32 %v2577_v58, %v686_v45 }
  0xfb   : > { %1166 = vmatprep.mubr.bf16.mxu0 %v907_v36  ;;  %1263 = vmatprep.mubr.bf16.mxu1 %v909_v37  ;;  %v776_v60 = vmul.f32 %v2577_v58, %v690_v44  ;;  %v538_v62 = vunpack.c.h.bf16 %v490_v42  ;;  %v534_v2 = vunpack.c.h.bf16 %v488_v47  ;;  %v687_v3 = vmul.f32 %v615_v24, %v527_v46 }
  0xfc   : > { %v683_v4 = vmul.f32 %v610_v26, %v523_v34  ;;  %v906_v5 = vpack.c.bf16 %v765_v52, %v761_v51  ;;  %v689_v6 = vmul.f32 %v615_v24, %v529_v48  ;;  %v685_v7 = vmul.f32 %v610_v26, %v525_v40  ;;  %v2645_v34 = vld [vmem:[%s2478_s28 + $0xa0] sm:$0xff] }
  0xfd   : > { %v908_v8 = vpack.c.bf16 %v767_v53, %v763_v38  ;;  %v911_v9 = vpack.c.bf16 %v774_v55, %v770_v54  ;;  %v696_v10 = vmul.f32 %v625_v61, %v536_v56  ;;  %v692_v11 = vmul.f32 %v620_v1, %v532_v39  ;;  %v635_v30 = vpop.permute.xlu1 %634  ;;  %v630_v32 = vpop.permute.xlu0 %629  ;;  %v498_v55 = vld [vmem:[%s2478_s28 + $0xb8] sm:$0xff]  ;;  %v496_v56 = vld [vmem:[%s2478_s28 + $0xa8] sm:$0xff] }
  0xfe   : > { %v913_v14 = vpack.c.bf16 %v776_v60, %v772_v59  ;;  %v535_v15 = vunpack.c.l.bf16 %v489_v49  ;;  %v537_v16 = vunpack.c.l.bf16 %v490_v42  ;;  %v698_v17 = vmul.f32 %v625_v61, %v538_v62 }
  0xff   : > { %v694_v18 = vmul.f32 %v620_v1, %v534_v2  ;;  %v531_v21 = vunpack.c.l.bf16 %v2607_v50  ;;  %v533_v22 = vunpack.c.l.bf16 %v488_v47  ;;  %v769_v23 = vmul.f32 %v2579_v63, %v683_v4  ;;  %v2642_v50 = vld [vmem:[%s2478_s28 + $0xb0] sm:$0xff] }
 0x100   : > { %v773_v24 = vmul.f32 %v2579_v63, %v687_v3  ;;  %v544_v25 = vunpack.c.h.bf16 %v2623_v12  ;;  %v540_v26 = vunpack.c.h.bf16 %v2626_v13  ;;  %v771_v28 = vmul.f32 %v2581_v0, %v685_v7 }
 0x101   : > { %v775_v29 = vmul.f32 %v2581_v0, %v689_v6  ;;  %v546_v31 = vunpack.c.h.bf16 %v494_v19  ;;  %v542_v33 = vunpack.c.h.bf16 %v492_v20  ;;  %v778_v35 = vmul.f32 %v2575_v57, %v692_v11  ;;  %v640_v7 = vpop.permute.xlu0 %639 }
 0x102   : > { %1167 = vmatmul.mubr.bf16.gmra.mrb[4].mxu0 %v906_v5  ;;  %1264 = vmatmul.mubr.bf16.gmra.mrb[4].mxu1 %v908_v8  ;;  %v782_v36 = vmul.f32 %v2575_v57, %v696_v10  ;;  %v780_v37 = vmul.f32 %v2577_v58, %v694_v18  ;;  %v784_v41 = vmul.f32 %v2577_v58, %v698_v17  ;;  %v543_v42 = vunpack.c.l.bf16 %v2623_v12  ;;  %v645_v5 = vpop.permute.xlu1 %644  ;;  %v2662_v18 = vld [vmem:[%s2478_s28 + $0xd0] sm:$0xff] }
 0x103   : > { %1174 = vmatprep.mubr.bf16.mxu0 %v911_v9  ;;  %1271 = vmatprep.mubr.bf16.mxu1 %v913_v14  ;;  %v695_v43 = vmul.f32 %v625_v61, %v535_v15  ;;  %v697_v27 = vmul.f32 %v625_v61, %v537_v16  ;;  %v691_v44 = vmul.f32 %v620_v1, %v531_v21  ;;  %v545_v38 = vunpack.c.l.bf16 %v494_v19  ;;  %v2665_v19 = vld [vmem:[%s2478_s28 + $0xc0] sm:$0xff] }
 0x104   : > { %v910_v45 = vpack.c.bf16 %v773_v24, %v769_v23  ;;  %v693_v46 = vmul.f32 %v620_v1, %v533_v22  ;;  %v704_v48 = vmul.f32 %v635_v30, %v544_v25  ;;  %v700_v49 = vmul.f32 %v630_v32, %v540_v26 }
 0x105   : > { %v912_v40 = vpack.c.bf16 %v775_v29, %v771_v28  ;;  %v706_v47 = vmul.f32 %v635_v30, %v546_v31  ;;  %v702_v51 = vmul.f32 %v630_v32, %v542_v33  ;;  %v915_v52 = vpack.c.bf16 %v782_v36, %v778_v35  ;;  %v500_v31 = vld [vmem:[%s2478_s28 + $0xc8] sm:$0xff] }
 0x106   : > { %v539_v53 = vunpack.c.l.bf16 %v2626_v13  ;;  %v541_v54 = vunpack.c.l.bf16 %v492_v20  ;;  %v917_v39 = vpack.c.bf16 %v784_v41, %v780_v37  ;;  %v552_v59 = vunpack.c.h.bf16 %v2642_v50 }
 0x107   : > { %v548_v60 = vunpack.c.h.bf16 %v2645_v34  ;;  %v777_v61 = vmul.f32 %v2579_v63, %v691_v44  ;;  %v781_v62 = vmul.f32 %v2579_v63, %v695_v43  ;;  %v779_v1 = vmul.f32 %v2581_v0, %v693_v46  ;;  %v655_v44 = vpop.permute.xlu1 %654  ;;  %v650_v46 = vpop.permute.xlu0 %649 }
 0x108   : > { %v783_v2 = vmul.f32 %v2581_v0, %v697_v27  ;;  %v786_v3 = vmul.f32 %v2575_v57, %v700_v49  ;;  %v790_v4 = vmul.f32 %v2575_v57, %v704_v48  ;;  %v554_v6 = vunpack.c.h.bf16 %v498_v55 }
 0x109   : > { %v550_v8 = vunpack.c.h.bf16 %v496_v56  ;;  %v788_v9 = vmul.f32 %v2577_v58, %v702_v51  ;;  %v792_v10 = vmul.f32 %v2577_v58, %v706_v47  ;;  %v703_v11 = vmul.f32 %v635_v30, %v543_v42 }
 0x10a   : > { %1175 = vmatmul.mubr.bf16.gmra.mrb[8].mxu0 %v910_v45  ;;  %1272 = vmatmul.mubr.bf16.gmra.mrb[8].mxu1 %v912_v40  ;;  %v705_v12 = vmul.f32 %v635_v30, %v545_v38  ;;  %v699_v13 = vmul.f32 %v630_v32, %v539_v53  ;;  %v701_v14 = vmul.f32 %v630_v32, %v541_v54  ;;  %v551_v25 = vunpack.c.l.bf16 %v2642_v50  ;;  %v502_v30 = vld [vmem:[%s2478_s28 + $0xd8] sm:$0xff]  ;;  %v505_v53 = vld [vmem:[%s2478_s28 + $0xf0] sm:$0xff]  ;;  %v503_v54 = vld [vmem:[%s2478_s28 + $0xe0] sm:$0xff] }
 0x10b   : > { %1182 = vmatprep.mubr.bf16.mxu0 %v915_v52  ;;  %1279 = vmatprep.mubr.bf16.mxu1 %v917_v39  ;;  %v914_v15 = vpack.c.bf16 %v781_v62, %v777_v61  ;;  %v712_v16 = vmul.f32 %v645_v5, %v552_v59  ;;  %v708_v17 = vmul.f32 %v640_v7, %v548_v60  ;;  %v553_v26 = vunpack.c.l.bf16 %v498_v55 }
 0x10c   : > { %v916_v20 = vpack.c.bf16 %v783_v2, %v779_v1  ;;  %v919_v21 = vpack.c.bf16 %v790_v4, %v786_v3  ;;  %v714_v22 = vmul.f32 %v645_v5, %v554_v6  ;;  %v710_v23 = vmul.f32 %v640_v7, %v550_v8  ;;  %v506_v3 = vld [vmem:[%s2478_s28 + $0xf8] sm:$0xff]  ;;  %v504_v4 = vld [vmem:[%s2478_s28 + $0xe8] sm:$0xff] }
 0x10d   : > { %v921_v24 = vpack.c.bf16 %v792_v10, %v788_v9  ;;  %v547_v28 = vunpack.c.l.bf16 %v2645_v34  ;;  %v549_v29 = vunpack.c.l.bf16 %v496_v56  ;;  %v560_v32 = vunpack.c.h.bf16 %v2662_v18 }
 0x10e   : > { %v556_v33 = vunpack.c.h.bf16 %v2665_v19  ;;  %v785_v35 = vmul.f32 %v2579_v63, %v699_v13  ;;  %v789_v36 = vmul.f32 %v2579_v63, %v703_v11  ;;  %v787_v37 = vmul.f32 %v2581_v0, %v701_v14  ;;  %v665_v13 = vpop.permute.xlu1 %664 }
 0x10f   : > { %v791_v41 = vmul.f32 %v2581_v0, %v705_v12  ;;  %v794_v43 = vmul.f32 %v2575_v57, %v708_v17  ;;  %v798_v27 = vmul.f32 %v2575_v57, %v712_v16  ;;  %v562_v45 = vunpack.c.h.bf16 %v502_v30 }
 0x110   : > { %v558_v48 = vunpack.c.h.bf16 %v500_v31  ;;  %v796_v49 = vmul.f32 %v2577_v58, %v710_v23  ;;  %v800_v50 = vmul.f32 %v2577_v58, %v714_v22  ;;  %v711_v34 = vmul.f32 %v645_v5, %v551_v25 }
 0x111   : > { %v713_v40 = vmul.f32 %v645_v5, %v553_v26  ;;  %v707_v42 = vmul.f32 %v640_v7, %v547_v28  ;;  %v709_v47 = vmul.f32 %v640_v7, %v549_v29  ;;  %v918_v51 = vpack.c.bf16 %v789_v36, %v785_v35 }
 0x112   : > { %1183 = vmatmul.mubr.bf16.gmra.mrb[12].mxu0 %v914_v15  ;;  %1280 = vmatmul.mubr.bf16.gmra.mrb[12].mxu1 %v916_v20  ;;  %v720_v52 = vmul.f32 %v655_v44, %v560_v32  ;;  %v716_v38 = vmul.f32 %v650_v46, %v556_v33  ;;  %v920_v55 = vpack.c.bf16 %v791_v41, %v787_v37  ;;  %v559_v61 = vunpack.c.l.bf16 %v2662_v18  ;;  %v660_v15 = vpop.permute.xlu0 %659 }
 0x113   : > { %1190 = vmatprep.mubr.bf16.mxu0 %v919_v21  ;;  %1287 = vmatprep.mubr.bf16.mxu1 %v921_v24  ;;  %v923_v56 = vpack.c.bf16 %v798_v27, %v794_v43  ;;  %v722_v39 = vmul.f32 %v655_v44, %v562_v45  ;;  %v718_v59 = vmul.f32 %v650_v46, %v558_v48  ;;  %v561_v62 = vunpack.c.l.bf16 %v502_v30 }
 0x114   : > { %v925_v60 = vpack.c.bf16 %v800_v50, %v796_v49  ;;  %v555_v1 = vunpack.c.l.bf16 %v2665_v19  ;;  %v557_v2 = vunpack.c.l.bf16 %v500_v31  ;;  %v568_v5 = vunpack.c.h.bf16 %v505_v53 }
 0x115   : > { %v564_v6 = vunpack.c.h.bf16 %v503_v54  ;;  %v793_v7 = vmul.f32 %v2579_v63, %v707_v42  ;;  %v797_v8 = vmul.f32 %v2579_v63, %v711_v34  ;;  %v795_v9 = vmul.f32 %v2581_v0, %v709_v47 }
 0x116   : > { %v799_v10 = vmul.f32 %v2581_v0, %v713_v40  ;;  %v802_v11 = vmul.f32 %v2575_v57, %v716_v38  ;;  %v806_v12 = vmul.f32 %v2575_v57, %v720_v52  ;;  %v570_v14 = vunpack.c.h.bf16 %v506_v3 }
 0x117   : > { %v566_v16 = vunpack.c.h.bf16 %v504_v4  ;;  %v804_v17 = vmul.f32 %v2577_v58, %v718_v59  ;;  %v808_v18 = vmul.f32 %v2577_v58, %v722_v39  ;;  %v719_v19 = vmul.f32 %v655_v44, %v559_v61 }
 0x118   : > { %v721_v20 = vmul.f32 %v655_v44, %v561_v62  ;;  %v715_v21 = vmul.f32 %v650_v46, %v555_v1  ;;  %v717_v22 = vmul.f32 %v650_v46, %v557_v2  ;;  %v922_v23 = vpack.c.bf16 %v797_v8, %v793_v7  ;;  %v887_v8 = vld [vmem:[#allocation2 + $0x8] sm:$0xff] }
 0x119   : > { %v728_v24 = vmul.f32 %v665_v13, %v568_v5  ;;  %v724_v25 = vmul.f32 %v660_v15, %v564_v6  ;;  %v924_v26 = vpack.c.bf16 %v799_v10, %v795_v9  ;;  %v927_v28 = vpack.c.bf16 %v806_v12, %v802_v11 }
 0x11a   : > { %1191 = vmatmul.mubr.bf16.gmra.mrb[16].mxu0 %v918_v51  ;;  %1288 = vmatmul.mubr.bf16.gmra.mrb[16].mxu1 %v920_v55  ;;  %v730_v29 = vmul.f32 %v665_v13, %v570_v14  ;;  %v726_v30 = vmul.f32 %v660_v15, %v566_v16  ;;  %v929_v31 = vpack.c.bf16 %v808_v18, %v804_v17  ;;  %v567_v32 = vunpack.c.l.bf16 %v505_v53 }
 0x11b   : > { %1198 = vmatprep.mubr.bf16.mxu0 %v923_v56  ;;  %1295 = vmatprep.mubr.bf16.mxu1 %v925_v60  ;;  %v569_v33 = vunpack.c.l.bf16 %v506_v3  ;;  %v563_v35 = vunpack.c.l.bf16 %v503_v54  ;;  %v565_v36 = vunpack.c.l.bf16 %v504_v4  ;;  %v801_v37 = vmul.f32 %v2579_v63, %v715_v21  ;;  %v886_v4 = vld [vmem:[#allocation2] sm:$0xff] }
 0x11c   : > { %v805_v41 = vmul.f32 %v2579_v63, %v719_v19  ;;  %v814_v43 = vmul.f32 %v2575_v57, %v728_v24  ;;  %v810_v27 = vmul.f32 %v2575_v57, %v724_v25  ;;  %v803_v44 = vmul.f32 %v2581_v0, %v717_v22  ;;  %v889_v25 = vld [vmem:[#allocation2 + $0x18] sm:$0xff] }
 0x11d   : > { %v807_v45 = vmul.f32 %v2581_v0, %v721_v20  ;;  %v816_v46 = vmul.f32 %v2577_v58, %v730_v29  ;;  %v812_v48 = vmul.f32 %v2577_v58, %v726_v30  ;;  %v727_v49 = vmul.f32 %v665_v13, %v567_v32  ;;  %v888_v20 = vld [vmem:[#allocation2 + $0x10] sm:$0xff] }
 0x11e   : > { %v723_v50 = vmul.f32 %v660_v15, %v563_v35  ;;  %v926_v34 = vpack.c.bf16 %v805_v41, %v801_v37  ;;  %v729_v40 = vmul.f32 %v665_v13, %v569_v33  ;;  %v725_v42 = vmul.f32 %v660_v15, %v565_v36 }
 0x11f   : > { %v928_v47 = vpack.c.bf16 %v807_v45, %v803_v44  ;;  %v931_v51 = vpack.c.bf16 %v814_v43, %v810_v27  ;;  %v933_v52 = vpack.c.bf16 %v816_v46, %v812_v48  ;;  %v813_v57 = vmul.f32 %v2579_v63, %v727_v49  ;;  %v890_v27 = vld [vmem:[#allocation2 + $0x20] sm:$0xff]  ;;  %v891_v49 = vld [vmem:[#allocation2 + $0x28] sm:$0xff] }
 0x120   : > { %v809_v38 = vmul.f32 %v2579_v63, %v723_v50  ;;  %v815_v53 = vmul.f32 %v2581_v0, %v729_v40  ;;  %v811_v58 = vmul.f32 %v2581_v0, %v725_v42 }
 0x122   : > { %1199 = vmatmul.mubr.bf16.gmra.mrb[20].mxu0 %v922_v23  ;;  %1296 = vmatmul.mubr.bf16.gmra.mrb[20].mxu1 %v924_v26  ;;  %v930_v54 = vpack.c.bf16 %v813_v57, %v809_v38  ;;  %v932_v55 = vpack.c.bf16 %v815_v53, %v811_v58 }
 0x123   : > { %1206 = vmatprep.mubr.bf16.mxu0 %v927_v28  ;;  %1303 = vmatprep.mubr.bf16.mxu1 %v929_v31 }
 0x12a   : > { %1207 = vmatmul.mubr.bf16.gmra.mrb[24].mxu0 %v926_v34  ;;  %1304 = vmatmul.mubr.bf16.gmra.mrb[24].mxu1 %v928_v47 }
 0x12b   : > { %1214 = vmatprep.mubr.bf16.mxu0 %v931_v51  ;;  %1311 = vmatprep.mubr.bf16.mxu1 %v933_v52 }
 0x132   : > { %1215 = vmatmul.mubr.bf16.gmra.mrb[28].mxu0 %v930_v54  ;;  %1312 = vmatmul.mubr.bf16.gmra.mrb[28].mxu1 %v932_v55  ;;  %v892_v55 = vld [vmem:[#allocation2 + $0x30] sm:$0xff] }
 0x1cd   : > { %v1924_v56 = vpop.f32.mrb[0].mxu0  ;;  %v1988_v39 = vpop.f32.mrb[0].mxu1 }
 0x1ce   : > { %v1925_v59 = vpop.f32.mrb[1].mxu0  ;;  %v1989_v61 = vpop.f32.mrb[1].mxu1 }
 0x1cf   : > { %v1926_v60 = vadd.f32 %v1925_v59, %v1924_v56  ;;  %v1927_v62 = vpop.f32.mrb[2].mxu0  ;;  %v1990_v1 = vadd.f32 %v1989_v61, %v1988_v39  ;;  %v1991_v2 = vpop.f32.mrb[2].mxu1  ;;  %v893_v61 = vld [vmem:[#allocation2 + $0x38] sm:$0xff] }
 0x1d0   : > { %v1928_v3 = vpop.f32.mrb[3].mxu0  ;;  %v1992_v5 = vpop.f32.mrb[3].mxu1 }
 0x1d1   : > { %v1929_v63 = vadd.f32 %v1928_v3, %v1927_v62  ;;  %v1258_v6 = vadd.f32 %v1990_v1, %v1926_v60  ;;  %v1993_v7 = vadd.f32 %v1992_v5, %v1991_v2 }
 0x1d3   : > { %v1320_v0 = vadd.f32 %v1258_v6, %v886_v4  ;;  %v1261_v9 = vadd.f32 %v1993_v7, %v1929_v63 }
 0x1d5   : > { %v1930_v10 = vpop.f32.mrb[4].mxu0  ;;  %1336 = vst [vmem:[#allocation2] sm:$0xff] %v1320_v0  ;;  %v1321_v11 = vadd.f32 %v1261_v9, %v887_v8  ;;  %v1994_v12 = vpop.f32.mrb[4].mxu1 }
 0x1d6   : > { %v1931_v13 = vpop.f32.mrb[5].mxu0  ;;  %v1995_v15 = vpop.f32.mrb[5].mxu1 }
 0x1d7   : > { %v1932_v14 = vadd.f32 %v1931_v13, %v1930_v10  ;;  %v1933_v16 = vpop.f32.mrb[6].mxu0  ;;  %1337 = vst [vmem:[#allocation2 + $0x8] sm:$0xff] %v1321_v11  ;;  %v1996_v17 = vadd.f32 %v1995_v15, %v1994_v12  ;;  %v1997_v18 = vpop.f32.mrb[6].mxu1  ;;  %v894_v10 = vld [vmem:[#allocation2 + $0x40] sm:$0xff]  ;;  %v895_v15 = vld [vmem:[#allocation2 + $0x48] sm:$0xff] }
 0x1d8   : > { %v1934_v19 = vpop.f32.mrb[7].mxu0  ;;  %v1998_v22 = vpop.f32.mrb[7].mxu1 }
 0x1d9   : > { %v1935_v21 = vadd.f32 %v1934_v19, %v1933_v16  ;;  %v1266_v23 = vadd.f32 %v1996_v17, %v1932_v14  ;;  %v1999_v24 = vadd.f32 %v1998_v22, %v1997_v18 }
 0x1db   : > { %v1322_v26 = vadd.f32 %v1266_v23, %v888_v20  ;;  %v1269_v28 = vadd.f32 %v1999_v24, %v1935_v21 }
 0x1dd   : > { %v1936_v29 = vpop.f32.mrb[8].mxu0  ;;  %1338 = vst [vmem:[#allocation2 + $0x10] sm:$0xff] %v1322_v26  ;;  %v1323_v30 = vadd.f32 %v1269_v28, %v889_v25  ;;  %v2000_v31 = vpop.f32.mrb[8].mxu1 }
 0x1de   : > { %v1937_v32 = vpop.f32.mrb[9].mxu0  ;;  %v2001_v35 = vpop.f32.mrb[9].mxu1 }
 0x1df   : > { %v1938_v33 = vadd.f32 %v1937_v32, %v1936_v29  ;;  %v1939_v36 = vpop.f32.mrb[10].mxu0  ;;  %1339 = vst [vmem:[#allocation2 + $0x18] sm:$0xff] %v1323_v30  ;;  %v2002_v37 = vadd.f32 %v2001_v35, %v2000_v31  ;;  %v2003_v41 = vpop.f32.mrb[10].mxu1  ;;  %v896_v29 = vld [vmem:[#allocation2 + $0x50] sm:$0xff]  ;;  %v897_v35 = vld [vmem:[#allocation2 + $0x58] sm:$0xff] }
 0x1e0   : > { %v1940_v43 = vpop.f32.mrb[11].mxu0  ;;  %v2004_v45 = vpop.f32.mrb[11].mxu1 }
 0x1e1   : > { %v1941_v44 = vadd.f32 %v1940_v43, %v1939_v36  ;;  %v1274_v46 = vadd.f32 %v2002_v37, %v1938_v33  ;;  %v2005_v48 = vadd.f32 %v2004_v45, %v2003_v41 }
 0x1e3   : > { %v1324_v50 = vadd.f32 %v1274_v46, %v890_v27  ;;  %v1277_v34 = vadd.f32 %v2005_v48, %v1941_v44 }
 0x1e5   : > { %v1942_v40 = vpop.f32.mrb[12].mxu0  ;;  %1340 = vst [vmem:[#allocation2 + $0x20] sm:$0xff] %v1324_v50  ;;  %v1325_v42 = vadd.f32 %v1277_v34, %v891_v49  ;;  %v2006_v47 = vpop.f32.mrb[12].mxu1 }
 0x1e6   : > { %v1943_v51 = vpop.f32.mrb[13].mxu0  ;;  %v2007_v57 = vpop.f32.mrb[13].mxu1 }
 0x1e7   : > { %v1944_v52 = vadd.f32 %v1943_v51, %v1942_v40  ;;  %v1945_v38 = vpop.f32.mrb[14].mxu0  ;;  %1341 = vst [vmem:[#allocation2 + $0x28] sm:$0xff] %v1325_v42  ;;  %v2008_v53 = vadd.f32 %v2007_v57, %v2006_v47  ;;  %v2009_v58 = vpop.f32.mrb[14].mxu1  ;;  %v898_v40 = vld [vmem:[#allocation2 + $0x60] sm:$0xff]  ;;  %v899_v57 = vld [vmem:[#allocation2 + $0x68] sm:$0xff] }
 0x1e8   : > { %v1946_v54 = vpop.f32.mrb[15].mxu0  ;;  %v2010_v39 = vpop.f32.mrb[15].mxu1 }
 0x1e9   : > { %v1947_v56 = vadd.f32 %v1946_v54, %v1945_v38  ;;  %v1282_v59 = vadd.f32 %v2008_v53, %v1944_v52  ;;  %v2011_v60 = vadd.f32 %v2010_v39, %v2009_v58 }
 0x1eb   : > { %v1326_v62 = vadd.f32 %v1282_v59, %v892_v55  ;;  %v1285_v1 = vadd.f32 %v2011_v60, %v1947_v56 }
 0x1ed   : > { %v1948_v2 = vpop.f32.mrb[16].mxu0  ;;  %1342 = vst [vmem:[#allocation2 + $0x30] sm:$0xff] %v1326_v62  ;;  %v1327_v3 = vadd.f32 %v1285_v1, %v893_v61  ;;  %v2012_v4 = vpop.f32.mrb[16].mxu1 }
 0x1ee   : > { %v1949_v63 = vpop.f32.mrb[17].mxu0  ;;  %v2013_v6 = vpop.f32.mrb[17].mxu1 }
 0x1ef   : > { %v1950_v5 = vadd.f32 %v1949_v63, %v1948_v2  ;;  %v1951_v7 = vpop.f32.mrb[18].mxu0  ;;  %1343 = vst [vmem:[#allocation2 + $0x38] sm:$0xff] %v1327_v3  ;;  %v2014_v8 = vadd.f32 %v2013_v6, %v2012_v4  ;;  %v2015_v0 = vpop.f32.mrb[18].mxu1  ;;  %v900_v2 = vld [vmem:[#allocation2 + $0x70] sm:$0xff]  ;;  %v901_v6 = vld [vmem:[#allocation2 + $0x78] sm:$0xff] }
 0x1f0   : > { %v1952_v9 = vpop.f32.mrb[19].mxu0  ;;  %v2016_v12 = vpop.f32.mrb[19].mxu1 }
 0x1f1   : > { %v1953_v11 = vadd.f32 %v1952_v9, %v1951_v7  ;;  %v1290_v13 = vadd.f32 %v2014_v8, %v1950_v5  ;;  %v2017_v14 = vadd.f32 %v2016_v12, %v2015_v0 }
 0x1f3   : > { %v1328_v16 = vadd.f32 %v1290_v13, %v894_v10  ;;  %v1293_v17 = vadd.f32 %v2017_v14, %v1953_v11 }
 0x1f5   : > { %v1954_v18 = vpop.f32.mrb[20].mxu0  ;;  %1344 = vst [vmem:[#allocation2 + $0x40] sm:$0xff] %v1328_v16  ;;  %v1329_v19 = vadd.f32 %v1293_v17, %v895_v15  ;;  %v2018_v20 = vpop.f32.mrb[20].mxu1 }
 0x1f6   : > { %v1955_v21 = vpop.f32.mrb[21].mxu0  ;;  %v2019_v23 = vpop.f32.mrb[21].mxu1 }
 0x1f7   : > { %v1956_v22 = vadd.f32 %v1955_v21, %v1954_v18  ;;  %v1957_v24 = vpop.f32.mrb[22].mxu0  ;;  %1345 = vst [vmem:[#allocation2 + $0x48] sm:$0xff] %v1329_v19  ;;  %v2020_v25 = vadd.f32 %v2019_v23, %v2018_v20  ;;  %v2021_v26 = vpop.f32.mrb[22].mxu1 }
 0x1f8   : > { %v1958_v28 = vpop.f32.mrb[23].mxu0  ;;  %v2022_v31 = vpop.f32.mrb[23].mxu1 }
 0x1f9   : > { %v1959_v30 = vadd.f32 %v1958_v28, %v1957_v24  ;;  %v1298_v32 = vadd.f32 %v2020_v25, %v1956_v22  ;;  %v2023_v33 = vadd.f32 %v2022_v31, %v2021_v26 }
 0x1fb   : > { %v1330_v36 = vadd.f32 %v1298_v32, %v896_v29  ;;  %v1301_v37 = vadd.f32 %v2023_v33, %v1959_v30 }
 0x1fd   : > { %v1960_v41 = vpop.f32.mrb[24].mxu0  ;;  %1346 = vst [vmem:[#allocation2 + $0x50] sm:$0xff] %v1330_v36  ;;  %v1331_v43 = vadd.f32 %v1301_v37, %v897_v35  ;;  %v2024_v27 = vpop.f32.mrb[24].mxu1 }
 0x1fe   : > { %v1961_v44 = vpop.f32.mrb[25].mxu0  ;;  %v2025_v46 = vpop.f32.mrb[25].mxu1 }
 0x1ff   : > { %v1962_v45 = vadd.f32 %v1961_v44, %v1960_v41  ;;  %v1963_v48 = vpop.f32.mrb[26].mxu0  ;;  %1347 = vst [vmem:[#allocation2 + $0x58] sm:$0xff] %v1331_v43  ;;  %v2026_v49 = vadd.f32 %v2025_v46, %v2024_v27  ;;  %v2027_v50 = vpop.f32.mrb[26].mxu1 }
 0x200   : > { %v1964_v34 = vpop.f32.mrb[27].mxu0  ;;  %v2028_v47 = vpop.f32.mrb[27].mxu1 }
 0x201   : > { %v1965_v42 = vadd.f32 %v1964_v34, %v1963_v48  ;;  %v1306_v51 = vadd.f32 %v2026_v49, %v1962_v45  ;;  %v2029_v52 = vadd.f32 %v2028_v47, %v2027_v50 }
 0x203   : > { %v1332_v38 = vadd.f32 %v1306_v51, %v898_v40  ;;  %v1309_v53 = vadd.f32 %v2029_v52, %v1965_v42 }
 0x205   : > { %v1966_v58 = vpop.f32.mrb[28].mxu0  ;;  %1348 = vst [vmem:[#allocation2 + $0x60] sm:$0xff] %v1332_v38  ;;  %v1333_v54 = vadd.f32 %v1309_v53, %v899_v57  ;;  %v2030_v55 = vpop.f32.mrb[28].mxu1 }
 0x206   : > { %v1967_v56 = vpop.f32.mrb[29].mxu0  ;;  %v2031_v59 = vpop.f32.mrb[29].mxu1 }
 0x207   : > { %v1968_v39 = vadd.f32 %v1967_v56, %v1966_v58  ;;  %v1969_v60 = vpop.f32.mrb[30].mxu0  ;;  %1349 = vst [vmem:[#allocation2 + $0x68] sm:$0xff] %v1333_v54  ;;  %v2032_v61 = vadd.f32 %v2031_v59, %v2030_v55  ;;  %v2033_v62 = vpop.f32.mrb[30].mxu1 }
 0x208   : > { %v1970_v1 = vpop.f32.mrb[31].mxu0  ;;  %v2034_v4 = vpop.f32.mrb[31].mxu1 }
 0x209   : > { %v1971_v3 = vadd.f32 %v1970_v1, %v1969_v60  ;;  %v1314_v63 = vadd.f32 %v2032_v61, %v1968_v39  ;;  %v2035_v5 = vadd.f32 %v2034_v4, %v2033_v62 }
 0x20b   : > { %v1334_v7 = vadd.f32 %v1314_v63, %v900_v2  ;;  %v1317_v8 = vadd.f32 %v2035_v5, %v1971_v3 }
 0x20d   : > { %1350 = vst [vmem:[#allocation2 + $0x70] sm:$0xff] %v1334_v7  ;;  %v1335_v0 = vadd.f32 %v1317_v8, %v901_v6 }
 0x20f   : > { %1351 = vst [vmem:[#allocation2 + $0x78] sm:$0xff] %v1335_v0 }
 0x210 PF: > { %p1816_p5 = scmp.ne.s32.totalorder %s2253_s8, 1 }
 0x211   : > { %s2796_s28 = sld [smem:[#allocation9_spill]] (!%p1816_p5)  ;;  %v1356_v13 = vld [vmem:[#allocation2] sm:$0xff] (!%p1816_p5)  ;;  %v1357_v14 = vld [vmem:[#allocation2 + $0x8] sm:$0xff] (!%p1816_p5)  ;;  %s2797_s0 = sld [smem:[#allocation8_spill]] (!%p1816_p5)  ;;  %v1358_v32 = vld [vmem:[#allocation2 + $0x10] sm:$0xff] (!%p1816_p5) }
 0x212   : > { %1355 = sbr.rel (%p1816_p5) target bundleno = 794 (0x31a), region = 79  ;;  %v1364_v18 = vld [vmem:[#allocation2 + $0x40] sm:$0xff] (!%p1816_p5)  ;;  %v1365_v19 = vld [vmem:[#allocation2 + $0x48] sm:$0xff] (!%p1816_p5)  ;;  %v1359_v33 = vld [vmem:[#allocation2 + $0x18] sm:$0xff] (!%p1816_p5) }
 0x213   : > { %v1366_v35 = vld [vmem:[#allocation2 + $0x50] sm:$0xff] (!%p1816_p5)  ;;  %v1367_v36 = vld [vmem:[#allocation2 + $0x58] sm:$0xff] (!%p1816_p5)  ;;  %v1360_v37 = vld [vmem:[#allocation2 + $0x20] sm:$0xff] (!%p1816_p5) }
 0x214   : > { %v1361_v41 = vld [vmem:[#allocation2 + $0x28] sm:$0xff] (!%p1816_p5)  ;;  %v1368_v43 = vld [vmem:[#allocation2 + $0x60] sm:$0xff] (!%p1816_p5)  ;;  %v1362_v38 = vld [vmem:[#allocation2 + $0x30] sm:$0xff] (!%p1816_p5) }
 0x215   : > { %v1369_v27 = vld [vmem:[#allocation2 + $0x68] sm:$0xff] (!%p1816_p5)  ;;  %v1363_v53 = vld [vmem:[#allocation2 + $0x38] sm:$0xff] (!%p1816_p5)  ;;  %v1370_v39 = vld [vmem:[#allocation2 + $0x70] sm:$0xff] (!%p1816_p5) }
 0x216   : > { %v1371_v59 = vld [vmem:[#allocation2 + $0x78] sm:$0xff] (!%p1816_p5) }
 0x217   : > { %v2193_v9 = vld [vmem:[%s2796_s28] sm:$0xff] (!%p1816_p5)   ;;  %v2194_v10 = vld [vmem:[%s2796_s28 + $0x8] sm:$0xff] (!%p1816_p5)   ;;  %v2195_v11 = vld [vmem:[%s2796_s28 + $0x10] sm:$0xff] (!%p1816_p5)  }
 0x218   : > { %2052 = vmatprep.subr.bf16.mxu0 (!%p1816_p5), %v2193_v9  ;;  %2084 = vmatprep.subr.bf16.mxu1 (!%p1816_p5), %v2193_v9  ;;  %v2196_v12 = vld [vmem:[%s2796_s28 + $0x18] sm:$0xff] (!%p1816_p5)   ;;  %v2723_v15 = vld [vmem:[%s2797_s0] ss:$0 sm:$0xff] (!%p1816_p5)  ;;  %v2198_v30 = vld [vmem:[%s2796_s28 + $0x28] sm:$0xff] (!%p1816_p5)  }
 0x219   : > { %2053 = vmatpush3.bf16.msra.mxu0 %v2193_v9  ;;  %2092 = vmatpush3.bf16.msra.mxu1 %v2193_v9  ;;  %v1379_v16 = vadd.f32 %v2723_v15, %v1356_v13  ;;  %v1380_v17 = vadd.f32 %v2723_v15, %v1357_v14  ;;  %v1387_v20 = vadd.f32 %v2723_v15, %v1364_v18  ;;  %v2197_v24 = vld [vmem:[%s2796_s28 + $0x20] sm:$0xff]   ;;  %v2199_v31 = vld [vmem:[%s2796_s28 + $0x30] sm:$0xff]   ;;  %v2200_v42 = vld [vmem:[%s2796_s28 + $0x38] sm:$0xff]  }
 0x21a   : > { %2054 = vmatprep.subr.bf16.mxu0 %v2194_v10  ;;  %2085 = vmatprep.subr.bf16.mxu1 %v2194_v10  ;;  %v1388_v21 = vadd.f32 %v2723_v15, %v1365_v19  ;;  %v1381_v44 = vadd.f32 %v2723_v15, %v1358_v32  ;;  %v1382_v45 = vadd.f32 %v2723_v15, %v1359_v33 }
 0x21b   : > { %v1395_v22 = vmax.f32 %v1379_v16, 0.0  ;;  %v1396_v23 = vmax.f32 %v1380_v17, 0.0  ;;  %v1403_v25 = vmax.f32 %v1387_v20, 0.0  ;;  %v1389_v46 = vadd.f32 %v2723_v15, %v1366_v35 }
 0x21c   : > { %v1404_v26 = vmax.f32 %v1388_v21, 0.0  ;;  %v1390_v48 = vadd.f32 %v2723_v15, %v1367_v36  ;;  %v1383_v49 = vadd.f32 %v2723_v15, %v1360_v37  ;;  %v1384_v50 = vadd.f32 %v2723_v15, %v1361_v41 }
 0x21d   : > { %2055 = vmatpush3.bf16.msra.mxu0 %v2194_v10  ;;  %2093 = vmatpush3.bf16.msra.mxu1 %v2194_v10  ;;  %v1411_v28 = vpack.c.bf16 %v1396_v23, %v1395_v22  ;;  %v1391_v34 = vadd.f32 %v2723_v15, %v1368_v43  ;;  %v1392_v40 = vadd.f32 %v2723_v15, %v1369_v27  ;;  %v1397_v47 = vmax.f32 %v1381_v44, 0.0 }
 0x21e   : > { %2056 = vmatprep.subr.bf16.mxu0 %v2195_v11  ;;  %2086 = vmatprep.subr.bf16.mxu1 %v2195_v11  ;;  %v1415_v29 = vpack.c.bf16 %v1404_v26, %v1403_v25  ;;  %v1398_v51 = vmax.f32 %v1382_v45, 0.0  ;;  %v1405_v52 = vmax.f32 %v1389_v46, 0.0  ;;  %v1406_v57 = vmax.f32 %v1390_v48, 0.0 }
 0x21f   : > { %2068 = vmatprep.mubr.bf16.mxu0 %v1411_v28  ;;  %v1399_v58 = vmax.f32 %v1383_v49, 0.0  ;;  %v1400_v54 = vmax.f32 %v1384_v50, 0.0  ;;  %v1407_v55 = vmax.f32 %v1391_v34, 0.0  ;;  %v1408_v56 = vmax.f32 %v1392_v40, 0.0 }
 0x220   : > { %2076 = vmatprep.mubr.bf16.mxu1 %v1415_v29  ;;  %v1412_v60 = vpack.c.bf16 %v1398_v51, %v1397_v47  ;;  %v1385_v61 = vadd.f32 %v2723_v15, %v1362_v38  ;;  %v1416_v62 = vpack.c.bf16 %v1406_v57, %v1405_v52  ;;  %v1386_v1 = vadd.f32 %v2723_v15, %v1363_v53 }
 0x221   : > { %2057 = vmatpush3.bf16.msra.mxu0 %v2195_v11  ;;  %2094 = vmatpush3.bf16.msra.mxu1 %v2195_v11  ;;  %v1393_v2 = vadd.f32 %v2723_v15, %v1370_v39  ;;  %v1394_v3 = vadd.f32 %v2723_v15, %v1371_v59  ;;  %v1413_v4 = vpack.c.bf16 %v1400_v54, %v1399_v58 }
 0x222   : > { %2058 = vmatprep.subr.bf16.mxu0 %v2196_v12  ;;  %2087 = vmatprep.subr.bf16.mxu1 %v2196_v12  ;;  %v1417_v63 = vpack.c.bf16 %v1408_v56, %v1407_v55  ;;  %v1401_v5 = vmax.f32 %v1385_v61, 0.0  ;;  %v1402_v6 = vmax.f32 %v1386_v1, 0.0 }
 0x223   : > { %v1409_v7 = vmax.f32 %v1393_v2, 0.0  ;;  %v1410_v8 = vmax.f32 %v1394_v3, 0.0 }
 0x224   : > { %v1414_v0 = vpack.c.bf16 %v1402_v6, %v1401_v5 }
 0x225   : > { %2059 = vmatpush3.bf16.msra.mxu0 %v2196_v12  ;;  %2095 = vmatpush3.bf16.msra.mxu1 %v2196_v12  ;;  %v1418_v9 = vpack.c.bf16 %v1410_v8, %v1409_v7 }
 0x226   : > { %2060 = vmatprep.subr.bf16.mxu0 %v2197_v24  ;;  %2088 = vmatprep.subr.bf16.mxu1 %v2197_v24 }
 0x229   : > { %2061 = vmatpush3.bf16.msra.mxu0 %v2197_v24  ;;  %2096 = vmatpush3.bf16.msra.mxu1 %v2197_v24 }
 0x22a   : > { %2062 = vmatprep.subr.bf16.mxu0 %v2198_v30  ;;  %2089 = vmatprep.subr.bf16.mxu1 %v2198_v30 }
 0x22d   : > { %2063 = vmatpush3.bf16.msra.mxu0 %v2198_v30  ;;  %2097 = vmatpush3.bf16.msra.mxu1 %v2198_v30 }
 0x22e   : > { %2064 = vmatprep.subr.bf16.mxu0 %v2199_v31  ;;  %2090 = vmatprep.subr.bf16.mxu1 %v2199_v31 }
 0x231   : > { %2065 = vmatpush3.bf16.msra.mxu0 %v2199_v31  ;;  %2098 = vmatpush3.bf16.msra.mxu1 %v2199_v31 }
 0x232   : > { %2066 = vmatprep.subr.bf16.mxu0 %v2200_v42  ;;  %2091 = vmatprep.subr.bf16.mxu1 %v2200_v42 }
 0x235   : > { %2067 = vmatpush3.bf16.msra.mxu0 %v2200_v42  ;;  %2099 = vmatpush3.bf16.msra.mxu1 %v2200_v42 }
 0x238   : > { %2069 = vmatmul.mubr.bf16.vlgmr.msra.gmra.mrb[0].mxu0 %v1412_v60  ;;  %2077 = vmatmul.mubr.bf16.vlgmr.msra.gmra.mrb[0].mxu1 %v1416_v62 }
 0x239   : > { %2072 = vmatprep.mubr.bf16.mxu0 %v1413_v4  ;;  %2080 = vmatprep.mubr.bf16.mxu1 %v1417_v63 }
 0x240   : > { %2073 = vmatmul.mubr.bf16.gmra.mrb[4].mxu0 %v1414_v0  ;;  %2081 = vmatmul.mubr.bf16.gmra.mrb[4].mxu1 %v1418_v9 }
 0x30b   : > { %v2070_v10 = vpop.f32.mrb[0].mxu0  ;;  %v2078_v11 = vpop.f32.mrb[0].mxu1 }
 0x30c   : > { %v1517_v12 = vpop.f32.mrb[1].mxu0  ;;  %v1549_v13 = vpop.f32.mrb[1].mxu1 }
 0x30d   : > { %v2071_v14 = vpop.f32.mrb[2].mxu0  ;;  %v2079_v15 = vpop.f32.mrb[2].mxu1 }
 0x30e   : > { %v1869_v16 = vpack.c.bf16 %v2071_v14, %v2070_v10  ;;  %v1889_v17 = vpack.c.bf16 %v2079_v15, %v2078_v11  ;;  %v1520_v18 = vpop.f32.mrb[3].mxu0  ;;  %v1552_v19 = vpop.f32.mrb[3].mxu1 }
 0x30f   : > { %v1864_v20 = vpack.c.bf16 %v1520_v18, %v1517_v12  ;;  %v1884_v21 = vpack.c.bf16 %v1552_v19, %v1549_v13 }
 0x310   : > { %1901 = vst [vmem:[%s2470_s27 + $0x8] sm:$0xff] %v1869_v16   ;;  %1905 = vst [vmem:[%s2470_s27 + $0x28] sm:$0xff] %v1889_v17  }
 0x311   : > { %1865 = vst [vmem:[%s2470_s27] sm:$0xff] %v1864_v20   ;;  %1904 = vst [vmem:[%s2470_s27 + $0x20] sm:$0xff] %v1884_v21  }
 0x313   : > { %v2074_v22 = vpop.f32.mrb[4].mxu0  ;;  %v2082_v23 = vpop.f32.mrb[4].mxu1 }
 0x314   : > { %v1533_v24 = vpop.f32.mrb[5].mxu0  ;;  %v1565_v25 = vpop.f32.mrb[5].mxu1 }
 0x315   : > { %v2075_v26 = vpop.f32.mrb[6].mxu0  ;;  %v2083_v28 = vpop.f32.mrb[6].mxu1 }
 0x316   : > { %v1879_v29 = vpack.c.bf16 %v2075_v26, %v2074_v22  ;;  %v1899_v30 = vpack.c.bf16 %v2083_v28, %v2082_v23  ;;  %v1536_v31 = vpop.f32.mrb[7].mxu0  ;;  %v1568_v32 = vpop.f32.mrb[7].mxu1 }
 0x317   : > { %v1874_v33 = vpack.c.bf16 %v1536_v31, %v1533_v24  ;;  %v1894_v35 = vpack.c.bf16 %v1568_v32, %v1565_v25 }
 0x318   : > { %1903 = vst [vmem:[%s2470_s27 + $0x18] sm:$0xff] %v1879_v29   ;;  %1907 = vst [vmem:[%s2470_s27 + $0x38] sm:$0xff] %v1899_v30  }
 0x319   : > { %1902 = vst [vmem:[%s2470_s27 + $0x10] sm:$0xff] %v1874_v33   ;;  %1906 = vst [vmem:[%s2470_s27 + $0x30] sm:$0xff] %v1894_v35  }
 0x31a PF: > { %s23_s11 = sadd.s32 1, %s2269_s11   ;;  %s2798_s29 = smov %s2249_s30 }
 0x31b   : > { %p20_p6 = scmp.ge.s32.totalorder %s23_s11, 18   ;;  %s2799_s30 = smov %s2378_s4 }
 0x31c   : > { %s2800_s8 = smov %s2261_s9  ;;  %s2801_s0 = smov %s2265_s10 }
 0x31d   : > { %s2802_s9 = smov %s2805_s12  ;;  %s2803_s10 = smov %s2809_s13 }
 0x31e   :  { %22 = sbr.rel (!%p20_p6) target bundleno = 20 (0x14), region = 121 }

</bundles_post_ra>
